<compile_context>
chip_gen: v6e
topology: v6e:2x2x1
jax: 0.10.0
libtpu: 0.0.40
codegen_flags: <defaults>
</compile_context>

<pallas_src>
import functools

import jax
import jax.numpy as jnp
from jax import lax
from jax.experimental import pallas as pl
from jax.experimental.pallas import tpu as pltpu

# ----------------------------- small config --------------------------------
BATCH = 2
IN_CH = 3
IMG = 16                 # spatial size
PATCH = 4                # backbone "conv" kernel == stride
FEAT_DIM = 32            # stands in for 2048
EMBED_DIM = 16           # stands in for 300
ATT_DIM = 32             # stands in for 1024
NUM_SCENES = 4
GCN_MID = 32             # stands in for 1024
OUT_CH = 32              # stands in for 2048 (must equal FEAT_DIM for concat+fc)
NUM_CLASSES = 8          # stands in for 80
N_TOKENS = (IMG // PATCH) * (IMG // PATCH)   # 16
PATCH_K = IN_CH * PATCH * PATCH              # 48


# ----------------------------- fused forward kernel -------------------------
def _fused_forward_kernel(
    # per-batch inputs
    patches_ref, inp_ref,
    # shared parameters / derived tensors
    conv_w_ref, centers_t_ref, c_sq_ref, comats_ref,
    att_w1_ref, att_w2_ref, att_wf_ref, att_bf_ref,
    gc1_ref, gc2_ref, fc_w1_ref, fc_w2_ref, fc_b_ref, cls_w_ref, cls_b_ref,
    # outputs
    logits_ref, comat_out_ref, sid_ref, ctx_ref,
):
    f32 = jnp.float32
    S, C = NUM_SCENES, NUM_CLASSES

    # ---- backbone stand-in: patches @ conv_w, ReLU --------------------------
    feats = jnp.maximum(
        jnp.dot(patches_ref[0], conv_w_ref[...], preferred_element_type=f32),
        0.0)                                                        # (N, F)

    # ---- image context + kmeans assignment (||x||^2+||c||^2-2 x.c on MXU) ---
    ctx = jnp.mean(feats, axis=0, keepdims=True)                    # (1, F)
    ctx_ref[0] = ctx
    xc = jnp.dot(ctx, centers_t_ref[...], preferred_element_type=f32)   # (1, S)
    x_sq = jnp.sum(ctx * ctx, axis=1, keepdims=True)                # (1, 1)
    dis = x_sq + c_sq_ref[...] - 2.0 * xc                           # (1, S)
    lane_ids = lax.broadcasted_iota(jnp.int32, (1, S), 1)
    min_d = jnp.min(dis, axis=1, keepdims=True)
    # first index achieving the minimum (matches torch.argmin tie-breaking)
    sid = jnp.min(jnp.where(dis == min_d, lane_ids, S),
                  axis=1, keepdims=True)                            # (1,1) int32
    sid_ref[0] = sid

    # ---- scene-conditioned adjacency: select comat + gen_adjs ---------------
    scene_iota = lax.broadcasted_iota(jnp.int32, (S, C, C), 0)
    sel = jnp.where(scene_iota == sid, comats_ref[...], 0.0)        # one-hot mask
    comat = jnp.sum(sel, axis=0)                                    # (C, C)
    comat_out_ref[0] = comat
    d = lax.rsqrt(jnp.sum(comat, axis=1, keepdims=True))            # (C, 1)
    comat_d = comat * d                                             # Ad[j,i]=A[j,i]d[j]

    def adj_mm(s):
        # adj @ s with adj = D A^T D, never materializing adj or a row-vector d
        return d * jnp.dot(comat_d.T, s, preferred_element_type=f32)

    # ---- low-rank bilinear attention (wh/wt folded: exact) ------------------
    x1p = jnp.dot(feats, att_w1_ref[...], preferred_element_type=f32)      # (N, A)
    x2p = jnp.dot(inp_ref[0], att_w2_ref[...], preferred_element_type=f32)  # (C, A)
    t = jnp.tanh(x2p[:, None, :] * x1p[None, :, :])                 # (C, N, A)
    s = jnp.sum(t * att_wf_ref[...], axis=-1) + att_bf_ref[...]     # (C, N)
    m = jnp.max(s, axis=-1, keepdims=True)
    e = jnp.exp(s - m)
    alpha = e * pl.reciprocal(jnp.sum(e, axis=-1, keepdims=True), approx=True)
    label_feats = jnp.dot(alpha, feats, preferred_element_type=f32)  # (C, F)

    # ---- two-layer GCN -------------------------------------------------------
    support1 = jnp.dot(label_feats, gc1_ref[...], preferred_element_type=f32)
    h1 = adj_mm(support1)
    h1 = jnp.where(h1 >= 0.0, h1, 0.2 * h1)                         # LeakyReLU(0.2)
    support2 = jnp.dot(h1, gc2_ref[...], preferred_element_type=f32)
    h2 = adj_mm(support2)                                           # (C, OUT_CH)

    # ---- fc(tanh) on concat (cat @ W == label_feats @ W1 + h2 @ W2) ---------
    fc_out = jnp.tanh(
        jnp.dot(label_feats, fc_w1_ref[...], preferred_element_type=f32)
        + jnp.dot(h2, fc_w2_ref[...], preferred_element_type=f32)
        + fc_b_ref[...])                                            # (C, F)

    # ---- element-wise classifier (fused, no fc_out HBM round trip) ----------
    prod = fc_out[None, :, :] * cls_w_ref[...][None, :, :]          # (1, C, F)
    logits_ref[0] = jnp.sum(prod, axis=2) + cls_b_ref[...]          # (1, C)


def _fused_forward(patches, inp, shared):
    B = patches.shape[0]
    N, KP = N_TOKENS, PATCH_K
    C, E = NUM_CLASSES, EMBED_DIM
    F, A = FEAT_DIM, ATT_DIM
    G, O, S = GCN_MID, OUT_CH, NUM_SCENES

    def shared_spec(shape):
        return pl.BlockSpec(shape, lambda b: (0,) * len(shape))

    in_specs = [
        pl.BlockSpec((1, N, KP), lambda b: (b, 0, 0)),   # patches
        pl.BlockSpec((1, C, E), lambda b: (b, 0, 0)),    # inp (label embeddings)
        shared_spec((KP, F)),     # conv_w
        shared_spec((F, S)),      # centers^T
        shared_spec((1, S)),      # ||centers||^2
        shared_spec((S, C, C)),   # comatrix2prob
        shared_spec((F, A)),      # att_w1
        shared_spec((E, A)),      # att_w2
        shared_spec((1, A)),      # folded wh @ wt^T
        shared_spec((1, 1)),      # folded bh @ wt^T + bt
        shared_spec((F, G)),      # gc1_w
        shared_spec((G, O)),      # gc2_w
        shared_spec((F, F)),      # fc_w (label_feats half)
        shared_spec((O, F)),      # fc_w (h2 half)
        shared_spec((1, F)),      # fc_b
        shared_spec((C, F)),      # cls_w
        shared_spec((1, C)),      # cls_b
    ]
    out_specs = (
        pl.BlockSpec((1, 1, C), lambda b: (b, 0, 0)),    # logits
        pl.BlockSpec((1, C, C), lambda b: (b, 0, 0)),    # selected comat
        pl.BlockSpec((1, 1, 1), lambda b: (b, 0, 0)),    # scene id
        pl.BlockSpec((1, 1, F), lambda b: (b, 0, 0)),    # image context
    )
    out_shape = (
        jax.ShapeDtypeStruct((B, 1, C), jnp.float32),
        jax.ShapeDtypeStruct((B, C, C), jnp.float32),
        jax.ShapeDtypeStruct((B, 1, 1), jnp.int32),
        jax.ShapeDtypeStruct((B, 1, F), jnp.float32),
    )

    flops = 2 * B * (N * KP * F + F * S + N * F * A + C * E * A + C * N * A
                     + C * N * F + C * F * G + C * C * G + C * G * O
                     + C * C * O + 2 * C * F * F + C * F)
    transcendentals = B * (C * N * A + C * N + C * F)
    bytes_accessed = 4 * (B * (N * KP + C * E + C + C * C + 1 + F)
                          + KP * F + F * S + S + S * C * C + F * A + E * A
                          + A + 1 + F * G + G * O + 2 * F * F + F + C * F + C)

    return pl.pallas_call(
        _fused_forward_kernel,
        out_shape=out_shape,
        grid=(B,),
        in_specs=in_specs,
        out_specs=out_specs,
        compiler_params=pltpu.CompilerParams(
            dimension_semantics=("parallel",),
            vmem_limit_bytes=32 * 1024 * 1024),
        cost_estimate=pl.CostEstimate(flops=flops,
                                      transcendentals=transcendentals,
                                      bytes_accessed=bytes_accessed),
    )(patches, inp, *shared)


# ----------------------------- kmeans center update -------------------------
def _centers_update_kernel(sid_ref, ctx_ref, centers_ref, cnts_ref, newc_ref):
    f32 = jnp.float32
    B, S = BATCH, NUM_SCENES
    sids = sid_ref[...]                                              # (B,1) int32
    onehot = (lax.broadcasted_iota(jnp.int32, (B, S), 1) == sids).astype(f32)
    # per-cluster counts and feature sums, both as MXU contractions over B
    counts = lax.dot_general(onehot, jnp.ones((B, 1), f32),
                             (((0,), (0,)), ((), ())),
                             preferred_element_type=f32)             # (S, 1)
    sums = lax.dot_general(onehot, ctx_ref[...],
                           (((0,), (0,)), ((), ())),
                           preferred_element_type=f32)               # (S, F)
    w1 = cnts_ref[...]                                               # (S, 1)
    denom = w1 + counts
    safe = jnp.where(denom > 0.0, denom, 1.0)
    updated = (w1 * centers_ref[...] + sums) / safe
    # "if len(selected) == 0: continue" -> keep old center when cluster empty
    newc_ref[...] = jnp.where(counts > 0.0, updated, centers_ref[...])


def _centers_update(scene_ids_2d, ctx, centers, scene_cnts):
    S, F = centers.shape
    return pl.pallas_call(
        _centers_update_kernel,
        out_shape=jax.ShapeDtypeStruct((S, F), jnp.float32),
    )(scene_ids_2d, ctx, centers, scene_cnts.reshape(S, 1))


# ----------------------------- JAX glue -------------------------------------
def extract_patches(x):
    """(B, Cin, H, W) NCHW -> (B, N, Cin*PATCH*PATCH) tokens (row-major H,W)."""
    B, Cin, H, W = x.shape
    ph, pw = H // PATCH, W // PATCH
    p = x.reshape(B, Cin, ph, PATCH, pw, PATCH)
    p = jnp.transpose(p, (0, 2, 4, 1, 3, 5))
    return p.reshape(B, ph * pw, Cin * PATCH * PATCH)


def comatrix2prob(comatrix):
    temp = jnp.diagonal(comatrix, axis1=1, axis2=2)[..., None]       # (S, C, 1)
    comat = comatrix / (temp + 1e-8)
    eye = jnp.eye(NUM_CLASSES, dtype=comat.dtype)
    return comat * (1.0 - eye) + eye                                  # diag -> 1


def resnet_kmeans_forward(params, x, inp):
    patches = extract_patches(x)                                     # (B, N, KP)

    centers = params["centers"]
    # parameter-only derived tensors (tiny, computed once per call in XLA)
    centers_t = centers.T                                            # (F, S)
    c_sq = jnp.sum(centers * centers, axis=1)[None, :]               # (1, S)
    comats_prob = comatrix2prob(params["comatrix"])                  # (S, C, C)
    # exact fold of hidden_linear (wh,bh) + target_linear (wt,bt):
    #   s = (t @ wh + bh) @ wt^T + bt == t @ (wh @ wt^T) + (bh @ wt^T + bt)
    att_wf = params["att_wt"] @ params["att_wh"].T                   # (1, A)
    att_bf = params["att_bh"] @ params["att_wt"].T + params["att_bt"]  # (1, 1)
    fc_w1 = params["fc_w"][:FEAT_DIM]                                # (F, F)
    fc_w2 = params["fc_w"][FEAT_DIM:]                                # (OUT_CH, F)

    shared = (
        params["conv_w"], centers_t, c_sq, comats_prob,
        params["att_w1"], params["att_w2"], att_wf, att_bf,
        params["gc1_w"], params["gc2_w"], fc_w1, fc_w2, params["fc_b"],
        params["cls_w"], params["cls_b"])

    logits3, comats, sid3, ctx3 = _fused_forward(patches, inp, shared)

    logits = logits3[:, 0, :]                                        # (B, C)
    scene_ids = sid3[:, 0, 0]                                        # (B,) int32
    ctx = ctx3[:, 0, :]                                              # (B, F)

    new_centers = _centers_update(sid3[:, 0, :], ctx, centers,
                                  params["scene_cnts"])

    out = {"output": logits, "comat": comats, "scene_indices": scene_ids}
    # TODO(synk): training-mode comatrix / total_scene_cnts in-place buffer
    # updates (require labels y and self.training) are not reproduced.
    return out, new_centers


# ----------------------------- parameters -----------------------------------
def init_params():
    key = jax.random.PRNGKey(0)
    ks = jax.random.split(key, 12)

    def u(k, shape, stdv):
        return jax.random.uniform(k, shape, jnp.float32, -stdv, stdv)

    return {
        "conv_w": u(ks[0], (PATCH_K, FEAT_DIM), 1.0 / PATCH_K ** 0.5),
        "centers": jax.random.normal(ks[1], (NUM_SCENES, FEAT_DIM), jnp.float32),
        "scene_cnts": jnp.zeros((NUM_SCENES,), jnp.float32),
        "comatrix": jnp.zeros((NUM_SCENES, NUM_CLASSES, NUM_CLASSES), jnp.float32),
        # attention (linear1/linear2 have no bias)
        "att_w1": u(ks[2], (FEAT_DIM, ATT_DIM), 1.0 / FEAT_DIM ** 0.5),
        "att_w2": u(ks[3], (EMBED_DIM, ATT_DIM), 1.0 / EMBED_DIM ** 0.5),
        "att_wh": u(ks[4], (ATT_DIM, ATT_DIM), 1.0 / ATT_DIM ** 0.5),
        "att_bh": u(ks[5], (1, ATT_DIM), 1.0 / ATT_DIM ** 0.5),
        "att_wt": u(ks[6], (1, ATT_DIM), 1.0 / ATT_DIM ** 0.5),
        "att_bt": u(ks[7], (1, 1), 1.0 / ATT_DIM ** 0.5),
        # GCN (bias=False)
        "gc1_w": u(ks[8], (FEAT_DIM, GCN_MID), 1.0 / GCN_MID ** 0.5),
        "gc2_w": u(ks[9], (GCN_MID, OUT_CH), 1.0 / OUT_CH ** 0.5),
        # fc = Linear(2F, F) + Tanh
        "fc_w": u(ks[10], (2 * FEAT_DIM, FEAT_DIM), 1.0 / (2 * FEAT_DIM) ** 0.5),
        "fc_b": u(ks[11], (1, FEAT_DIM), 1.0 / (2 * FEAT_DIM) ** 0.5),
        # Element_Wise_Layer(num_classes, feat_dim)
        "cls_w": u(jax.random.fold_in(key, 100), (NUM_CLASSES, FEAT_DIM),
                   1.0 / FEAT_DIM ** 0.5),
        "cls_b": u(jax.random.fold_in(key, 101), (1, NUM_CLASSES),
                   1.0 / FEAT_DIM ** 0.5),
    }


# ----------------------------- main ------------------------------------------
if __name__ == "__main__":
    params = init_params()
    dkey = jax.random.PRNGKey(0)
    kx, ki = jax.random.split(dkey)
    x = jax.random.normal(kx, (BATCH, IN_CH, IMG, IMG), jnp.float32)       # NCHW
    inp = jax.random.normal(ki, (BATCH, NUM_CLASSES, EMBED_DIM), jnp.float32)

    fwd = jax.jit(functools.partial(resnet_kmeans_forward, params))
    out, new_centers = fwd(x, inp)
    jax.block_until_ready(out)
    jax.block_until_ready(new_centers)

    assert out["output"].shape == (BATCH, NUM_CLASSES)
    assert out["comat"].shape == (BATCH, NUM_CLASSES, NUM_CLASSES)
    assert out["scene_indices"].shape == (BATCH,)
    assert new_centers.shape == (NUM_SCENES, FEAT_DIM)
    print("KERNEL_OK")
</pallas_src>

<mosaic_0001>
module attributes {stable_mosaic.version = 11 : i64} {
  func.func @_centers_update_kernel(%arg0: memref<2x1xi32, #tpu.memory_space<vmem>>, %arg1: memref<2x32xf32, #tpu.memory_space<vmem>>, %arg2: memref<4x32xf32, #tpu.memory_space<vmem>>, %arg3: memref<4x1xf32, #tpu.memory_space<vmem>>, %arg4: memref<4x32xf32, #tpu.memory_space<vmem>>) attributes {dimension_semantics = [], scalar_prefetch = 0 : i64, scratch_operands = 0 : i64, tpu.core_type = #tpu.core_type<tc>} {
    %c0 = arith.constant 0 : index
    %c0_0 = arith.constant 0 : index
    %0 = vector.load %arg0[%c0, %c0_0] : memref<2x1xi32, #tpu.memory_space<vmem>>, vector<2x1xi32>
    %1 = tpu.iota {dimensions = array<i32: 1>} : vector<2x4xi32>
    %2 = vector.broadcast %0 : vector<2x1xi32> to vector<2x4xi32>
    %3 = arith.cmpi eq, %1, %2 : vector<2x4xi32>
    %4 = arith.extui %3 : vector<2x4xi1> to vector<2x4xi32>
    %5 = arith.sitofp %4 : vector<2x4xi32> to vector<2x4xf32>
    %cst = arith.constant 1.000000e+00 : f32
    %6 = vector.broadcast %cst : f32 to vector<2x1xf32>
    %cst_1 = arith.constant dense<0.000000e+00> : vector<4x1xf32>
    %7 = tpu.matmul %5, %6, %cst_1 {dimension_numbers = #tpu.dot_dimension_numbers<[0], [0], [1], [1], [0, 1, 1, 1], [], []>} : vector<2x4xf32>, vector<2x1xf32>, vector<4x1xf32> -> vector<4x1xf32>
    %c0_2 = arith.constant 0 : index
    %c0_3 = arith.constant 0 : index
    %8 = vector.load %arg1[%c0_2, %c0_3] : memref<2x32xf32, #tpu.memory_space<vmem>>, vector<2x32xf32>
    %cst_4 = arith.constant dense<0.000000e+00> : vector<4x32xf32>
    %9 = tpu.matmul %5, %8, %cst_4 {dimension_numbers = #tpu.dot_dimension_numbers<[0], [0], [1], [1], [0, 1, 1, 1], [], []>} : vector<2x4xf32>, vector<2x32xf32>, vector<4x32xf32> -> vector<4x32xf32>
    %c0_5 = arith.constant 0 : index
    %c0_6 = arith.constant 0 : index
    %10 = vector.load %arg3[%c0_5, %c0_6] : memref<4x1xf32, #tpu.memory_space<vmem>>, vector<4x1xf32>
    %11 = arith.addf %10, %7 : vector<4x1xf32>
    %cst_7 = arith.constant 0.000000e+00 : f32
    %12 = vector.broadcast %cst_7 : f32 to vector<4x1xf32>
    %13 = arith.cmpf ogt, %11, %12 : vector<4x1xf32>
    %cst_8 = arith.constant 1.000000e+00 : f32
    %14 = vector.broadcast %cst_8 : f32 to vector<4x1xf32>
    %15 = arith.select %13, %11, %14 : vector<4x1xi1>, vector<4x1xf32>
    %c0_9 = arith.constant 0 : index
    %c0_10 = arith.constant 0 : index
    %16 = vector.load %arg2[%c0_9, %c0_10] : memref<4x32xf32, #tpu.memory_space<vmem>>, vector<4x32xf32>
    %17 = vector.broadcast %10 : vector<4x1xf32> to vector<4x32xf32>
    %18 = arith.mulf %17, %16 : vector<4x32xf32>
    %19 = arith.addf %18, %9 : vector<4x32xf32>
    %20 = vector.broadcast %15 : vector<4x1xf32> to vector<4x32xf32>
    %21 = arith.divf %19, %20 : vector<4x32xf32>
    %cst_11 = arith.constant 0.000000e+00 : f32
    %22 = vector.broadcast %cst_11 : f32 to vector<4x1xf32>
    %23 = arith.cmpf ogt, %7, %22 : vector<4x1xf32>
    %c0_12 = arith.constant 0 : index
    %c0_13 = arith.constant 0 : index
    %24 = vector.load %arg2[%c0_12, %c0_13] : memref<4x32xf32, #tpu.memory_space<vmem>>, vector<4x32xf32>
    %25 = vector.shape_cast %23 : vector<4x1xi1> to vector<4x1xi1>
    %26 = vector.broadcast %25 : vector<4x1xi1> to vector<4x32xi1>
    %27 = arith.select %26, %21, %24 : vector<4x32xi1>, vector<4x32xf32>
    %c0_14 = arith.constant 0 : index
    %c0_15 = arith.constant 0 : index
    %28 = vector.load %arg4[%c0_14, %c0_15] : memref<4x32xf32, #tpu.memory_space<vmem>>, vector<4x32xf32>
    tpu.vector_store %arg4[%c0_14, %c0_15], %27 {strides = array<i32>} : memref<4x32xf32, #tpu.memory_space<vmem>>, vector<4x32xf32>,
    return
  }
}

module attributes {stable_mosaic.version = 11 : i64} {
  func.func @_fused_forward_kernel(%arg0: i32, %arg1: memref<1x16x48xf32, #tpu.memory_space<vmem>>, %arg2: memref<1x8x16xf32, #tpu.memory_space<vmem>>, %arg3: memref<48x32xf32, #tpu.memory_space<vmem>>, %arg4: memref<32x4xf32, #tpu.memory_space<vmem>>, %arg5: memref<1x4xf32, #tpu.memory_space<vmem>>, %arg6: memref<4x8x8xf32, #tpu.memory_space<vmem>>, %arg7: memref<32x32xf32, #tpu.memory_space<vmem>>, %arg8: memref<16x32xf32, #tpu.memory_space<vmem>>, %arg9: memref<1x32xf32, #tpu.memory_space<vmem>>, %arg10: memref<1x1xf32, #tpu.memory_space<vmem>>, %arg11: memref<32x32xf32, #tpu.memory_space<vmem>>, %arg12: memref<32x32xf32, #tpu.memory_space<vmem>>, %arg13: memref<32x32xf32, #tpu.memory_space<vmem>>, %arg14: memref<32x32xf32, #tpu.memory_space<vmem>>, %arg15: memref<1x32xf32, #tpu.memory_space<vmem>>, %arg16: memref<8x32xf32, #tpu.memory_space<vmem>>, %arg17: memref<1x8xf32, #tpu.memory_space<vmem>>, %arg18: memref<1x1x8xf32, #tpu.memory_space<vmem>>, %arg19: memref<1x8x8xf32, #tpu.memory_space<vmem>>, %arg20: memref<1x1x1xi32, #tpu.memory_space<vmem>>, %arg21: memref<1x1x32xf32, #tpu.memory_space<vmem>>) attributes {dimension_semantics = [#tpu.dimension_semantics<parallel>], iteration_bounds = array<i64: 2>, scalar_prefetch = 0 : i64, scratch_operands = 0 : i64, tpu.core_type = #tpu.core_type<tc>, window_params = [{transform_indices = @transform_0, window_bounds = array<i64: 1, 16, 48>}, {transform_indices = @transform_1, window_bounds = array<i64: 1, 8, 16>}, {pipeline_mode = #tpu.pipeline_mode<synchronous>, transform_indices = @transform_2, window_bounds = array<i64: 48, 32>}, {pipeline_mode = #tpu.pipeline_mode<synchronous>, transform_indices = @transform_3, window_bounds = array<i64: 32, 4>}, {pipeline_mode = #tpu.pipeline_mode<synchronous>, transform_indices = @transform_4, window_bounds = array<i64: 1, 4>}, {pipeline_mode = #tpu.pipeline_mode<synchronous>, transform_indices = @transform_5, window_bounds = array<i64: 4, 8, 8>}, {pipeline_mode = #tpu.pipeline_mode<synchronous>, transform_indices = @transform_6, window_bounds = array<i64: 32, 32>}, {pipeline_mode = #tpu.pipeline_mode<synchronous>, transform_indices = @transform_7, window_bounds = array<i64: 16, 32>}, {pipeline_mode = #tpu.pipeline_mode<synchronous>, transform_indices = @transform_8, window_bounds = array<i64: 1, 32>}, {pipeline_mode = #tpu.pipeline_mode<synchronous>, transform_indices = @transform_9, window_bounds = array<i64: 1, 1>}, {pipeline_mode = #tpu.pipeline_mode<synchronous>, transform_indices = @transform_10, window_bounds = array<i64: 32, 32>}, {pipeline_mode = #tpu.pipeline_mode<synchronous>, transform_indices = @transform_11, window_bounds = array<i64: 32, 32>}, {pipeline_mode = #tpu.pipeline_mode<synchronous>, transform_indices = @transform_12, window_bounds = array<i64: 32, 32>}, {pipeline_mode = #tpu.pipeline_mode<synchronous>, transform_indices = @transform_13, window_bounds = array<i64: 32, 32>}, {pipeline_mode = #tpu.pipeline_mode<synchronous>, transform_indices = @transform_14, window_bounds = array<i64: 1, 32>}, {pipeline_mode = #tpu.pipeline_mode<synchronous>, transform_indices = @transform_15, window_bounds = array<i64: 8, 32>}, {pipeline_mode = #tpu.pipeline_mode<synchronous>, transform_indices = @transform_16, window_bounds = array<i64: 1, 8>}, {transform_indices = @transform_17, window_bounds = array<i64: 1, 1, 8>}, {transform_indices = @transform_18, window_bounds = array<i64: 1, 8, 8>}, {transform_indices = @transform_19, window_bounds = array<i64: 1, 1, 1>}, {transform_indices = @transform_20, window_bounds = array<i64: 1, 1, 32>}]} {
    %c0 = arith.constant 0 : index
    %c0_0 = arith.constant 0 : index
    %c0_1 = arith.constant 0 : index
    %0 = vector.load %arg1[%c0, %c0_0, %c0_1] : memref<1x16x48xf32, #tpu.memory_space<vmem>>, vector<1x16x48xf32>
    %1 = vector.shape_cast %0 : vector<1x16x48xf32> to vector<16x48xf32>
    %c0_2 = arith.constant 0 : index
    %c0_3 = arith.constant 0 : index
    %2 = vector.load %arg3[%c0_2, %c0_3] : memref<48x32xf32, #tpu.memory_space<vmem>>, vector<48x32xf32>
    %cst = arith.constant dense<0.000000e+00> : vector<16x32xf32>
    %3 = tpu.matmul %1, %2, %cst {dimension_numbers = #tpu.dot_dimension_numbers<[1], [0], [0], [1], [0, 0, 1, 1], [], []>} : vector<16x48xf32>, vector<48x32xf32>, vector<16x32xf32> -> vector<16x32xf32>
    %cst_4 = arith.constant 0.000000e+00 : f32
    %4 = vector.broadcast %cst_4 : f32 to vector<16x32xf32>
    %5 = arith.maximumf %3, %4 : vector<16x32xf32>
    %cst_5 = arith.constant dense<0.000000e+00> : vector<32xf32>
    %6 = vector.multi_reduction <add>, %5, %cst_5 [0] : vector<16x32xf32> to vector<32xf32>
    %7 = vector.shape_cast %6 : vector<32xf32> to vector<1x32xf32>
    %cst_6 = arith.constant 1.600000e+01 : f32
    %8 = vector.broadcast %cst_6 : f32 to vector<1x32xf32>
    %9 = arith.divf %7, %8 : vector<1x32xf32>
    %c0_7 = arith.constant 0 : index
    %c0_8 = arith.constant 0 : index
    %c0_9 = arith.constant 0 : index
    %10 = vector.load %arg21[%c0_7, %c0_8, %c0_9] : memref<1x1x32xf32, #tpu.memory_space<vmem>>, vector<1x1x32xf32>
    %11 = vector.shape_cast %10 : vector<1x1x32xf32> to vector<1x32xf32>
    %12 = vector.shape_cast %9 : vector<1x32xf32> to vector<1x1x32xf32>
    tpu.vector_store %arg21[%c0_7, %c0_8, %c0_9], %12 {strides = array<i32>} : memref<1x1x32xf32, #tpu.memory_space<vmem>>, vector<1x1x32xf32>,
    %c0_10 = arith.constant 0 : index
    %c0_11 = arith.constant 0 : index
    %13 = vector.load %arg4[%c0_10, %c0_11] : memref<32x4xf32, #tpu.memory_space<vmem>>, vector<32x4xf32>
    %cst_12 = arith.constant dense<0.000000e+00> : vector<1x4xf32>
    %14 = tpu.matmul %9, %13, %cst_12 {dimension_numbers = #tpu.dot_dimension_numbers<[1], [0], [0], [1], [0, 0, 1, 1], [], []>} : vector<1x32xf32>, vector<32x4xf32>, vector<1x4xf32> -> vector<1x4xf32>
    %15 = arith.mulf %9, %9 : vector<1x32xf32>
    %cst_13 = arith.constant dense<0.000000e+00> : vector<1xf32>
    %16 = vector.multi_reduction <add>, %15, %cst_13 [1] : vector<1x32xf32> to vector<1xf32>
    %17 = vector.shape_cast %16 : vector<1xf32> to vector<1x1xf32>
    %c0_14 = arith.constant 0 : index
    %c0_15 = arith.constant 0 : index
    %18 = vector.load %arg5[%c0_14, %c0_15] : memref<1x4xf32, #tpu.memory_space<vmem>>, vector<1x4xf32>
    %19 = vector.broadcast %17 : vector<1x1xf32> to vector<1x4xf32>
    %20 = arith.addf %19, %18 : vector<1x4xf32>
    %cst_16 = arith.constant 2.000000e+00 : f32
    %21 = vector.broadcast %cst_16 : f32 to vector<1x4xf32>
    %22 = arith.mulf %21, %14 : vector<1x4xf32>
    %23 = arith.subf %20, %22 : vector<1x4xf32>
    %24 = tpu.iota {dimensions = array<i32: 1>} : vector<1x4xi32>
    %cst_17 = arith.constant dense<0x7F800000> : vector<1xf32>
    %25 = vector.multi_reduction <minimumf>, %23, %cst_17 [1] : vector<1x4xf32> to vector<1xf32>
    %26 = vector.shape_cast %25 : vector<1xf32> to vector<1x1xf32>
    %27 = vector.broadcast %26 : vector<1x1xf32> to vector<1x4xf32>
    %28 = arith.cmpf oeq, %23, %27 : vector<1x4xf32>
    %c4_i32 = arith.constant 4 : i32
    %29 = vector.broadcast %c4_i32 : i32 to vector<1x4xi32>
    %30 = arith.select %28, %24, %29 : vector<1x4xi1>, vector<1x4xi32>
    %cst_18 = arith.constant dense<2147483647> : vector<1xi32>
    %31 = vector.multi_reduction <minsi>, %30, %cst_18 [1] : vector<1x4xi32> to vector<1xi32>
    %32 = vector.shape_cast %31 : vector<1xi32> to vector<1x1xi32>
    %c0_19 = arith.constant 0 : index
    %c0_20 = arith.constant 0 : index
    %c0_21 = arith.constant 0 : index
    %33 = vector.load %arg20[%c0_19, %c0_20, %c0_21] : memref<1x1x1xi32, #tpu.memory_space<vmem>>, vector<1x1x1xi32>
    %34 = vector.shape_cast %33 : vector<1x1x1xi32> to vector<1x1xi32>
    %35 = vector.shape_cast %32 : vector<1x1xi32> to vector<1x1x1xi32>
    tpu.vector_store %arg20[%c0_19, %c0_20, %c0_21], %35 {strides = array<i32>} : memref<1x1x1xi32, #tpu.memory_space<vmem>>, vector<1x1x1xi32>,
    %36 = tpu.iota {dimensions = array<i32: 0>} : vector<4x8x8xi32>
    %37 = vector.shape_cast %32 : vector<1x1xi32> to vector<1x1x1xi32>
    %38 = vector.broadcast %37 : vector<1x1x1xi32> to vector<4x8x8xi32>
    %39 = arith.cmpi eq, %36, %38 : vector<4x8x8xi32>
    %c0_22 = arith.constant 0 : index
    %c0_23 = arith.constant 0 : index
    %c0_24 = arith.constant 0 : index
    %40 = vector.load %arg6[%c0_22, %c0_23, %c0_24] : memref<4x8x8xf32, #tpu.memory_space<vmem>>, vector<4x8x8xf32>
    %cst_25 = arith.constant 0.000000e+00 : f32
    %41 = vector.broadcast %cst_25 : f32 to vector<4x8x8xf32>
    %42 = arith.select %39, %40, %41 : vector<4x8x8xi1>, vector<4x8x8xf32>
    %cst_26 = arith.constant dense<0.000000e+00> : vector<8x8xf32>
    %43 = vector.multi_reduction <add>, %42, %cst_26 [0] : vector<4x8x8xf32> to vector<8x8xf32>
    %c0_27 = arith.constant 0 : index
    %c0_28 = arith.constant 0 : index
    %c0_29 = arith.constant 0 : index
    %44 = vector.load %arg19[%c0_27, %c0_28, %c0_29] : memref<1x8x8xf32, #tpu.memory_space<vmem>>, vector<1x8x8xf32>
    %45 = vector.shape_cast %44 : vector<1x8x8xf32> to vector<8x8xf32>
    %46 = vector.shape_cast %43 : vector<8x8xf32> to vector<1x8x8xf32>
    tpu.vector_store %arg19[%c0_27, %c0_28, %c0_29], %46 {strides = array<i32>} : memref<1x8x8xf32, #tpu.memory_space<vmem>>, vector<1x8x8xf32>,
    %cst_30 = arith.constant dense<0.000000e+00> : vector<8xf32>
    %47 = vector.multi_reduction <add>, %43, %cst_30 [1] : vector<8x8xf32> to vector<8xf32>
    %48 = vector.shape_cast %47 : vector<8xf32> to vector<8x1xf32>
    %49 = math.rsqrt %48 : vector<8x1xf32>
    %50 = vector.broadcast %49 : vector<8x1xf32> to vector<8x8xf32>
    %51 = arith.mulf %43, %50 : vector<8x8xf32>
    %c0_31 = arith.constant 0 : index
    %c0_32 = arith.constant 0 : index
    %52 = vector.load %arg7[%c0_31, %c0_32] : memref<32x32xf32, #tpu.memory_space<vmem>>, vector<32x32xf32>
    %cst_33 = arith.constant dense<0.000000e+00> : vector<16x32xf32>
    %53 = tpu.matmul %5, %52, %cst_33 {dimension_numbers = #tpu.dot_dimension_numbers<[1], [0], [0], [1], [0, 0, 1, 1], [], []>} : vector<16x32xf32>, vector<32x32xf32>, vector<16x32xf32> -> vector<16x32xf32>
    %c0_34 = arith.constant 0 : index
    %c0_35 = arith.constant 0 : index
    %c0_36 = arith.constant 0 : index
    %54 = vector.load %arg2[%c0_34, %c0_35, %c0_36] : memref<1x8x16xf32, #tpu.memory_space<vmem>>, vector<1x8x16xf32>
    %55 = vector.shape_cast %54 : vector<1x8x16xf32> to vector<8x16xf32>
    %c0_37 = arith.constant 0 : index
    %c0_38 = arith.constant 0 : index
    %56 = vector.load %arg8[%c0_37, %c0_38] : memref<16x32xf32, #tpu.memory_space<vmem>>, vector<16x32xf32>
    %cst_39 = arith.constant dense<0.000000e+00> : vector<8x32xf32>
    %57 = tpu.matmul %55, %56, %cst_39 {dimension_numbers = #tpu.dot_dimension_numbers<[1], [0], [0], [1], [0, 0, 1, 1], [], []>} : vector<8x16xf32>, vector<16x32xf32>, vector<8x32xf32> -> vector<8x32xf32>
    %58 = vector.shape_cast %57 : vector<8x32xf32> to vector<8x1x32xf32>
    %59 = vector.shape_cast %53 : vector<16x32xf32> to vector<1x16x32xf32>
    %60 = vector.broadcast %58 : vector<8x1x32xf32> to vector<8x16x32xf32>
    %61 = vector.broadcast %59 : vector<1x16x32xf32> to vector<8x16x32xf32>
    %62 = arith.mulf %60, %61 : vector<8x16x32xf32>
    %63 = math.tanh %62 : vector<8x16x32xf32>
    %c0_40 = arith.constant 0 : index
    %c0_41 = arith.constant 0 : index
    %64 = vector.load %arg9[%c0_40, %c0_41] : memref<1x32xf32, #tpu.memory_space<vmem>>, vector<1x32xf32>
    %65 = vector.shape_cast %64 : vector<1x32xf32> to vector<1x1x32xf32>
    %66 = vector.broadcast %65 : vector<1x1x32xf32> to vector<8x16x32xf32>
    %67 = arith.mulf %63, %66 : vector<8x16x32xf32>
    %cst_42 = arith.constant dense<0.000000e+00> : vector<8x16xf32>
    %68 = vector.multi_reduction <add>, %67, %cst_42 [2] : vector<8x16x32xf32> to vector<8x16xf32>
    %c0_43 = arith.constant 0 : index
    %c0_44 = arith.constant 0 : index
    %69 = vector.load %arg10[%c0_43, %c0_44] : memref<1x1xf32, #tpu.memory_space<vmem>>, vector<1x1xf32>
    %70 = vector.broadcast %69 : vector<1x1xf32> to vector<8x16xf32>
    %71 = arith.addf %68, %70 : vector<8x16xf32>
    %cst_45 = arith.constant dense<0xFF800000> : vector<8xf32>
    %72 = vector.multi_reduction <maximumf>, %71, %cst_45 [1] : vector<8x16xf32> to vector<8xf32>
    %73 = vector.shape_cast %72 : vector<8xf32> to vector<8x1xf32>
    %74 = vector.broadcast %73 : vector<8x1xf32> to vector<8x16xf32>
    %75 = arith.subf %71, %74 : vector<8x16xf32>
    %76 = math.exp %75 : vector<8x16xf32>
    %cst_46 = arith.constant dense<0.000000e+00> : vector<8xf32>
    %77 = vector.multi_reduction <add>, %76, %cst_46 [1] : vector<8x16xf32> to vector<8xf32>
    %78 = vector.shape_cast %77 : vector<8xf32> to vector<8x1xf32>
    %79 = tpu.reciprocal %78 {approx = true} : vector<8x1xf32> -> vector<8x1xf32>
    %80 = vector.broadcast %79 : vector<8x1xf32> to vector<8x16xf32>
    %81 = arith.mulf %76, %80 : vector<8x16xf32>
    %cst_47 = arith.constant dense<0.000000e+00> : vector<8x32xf32>
    %82 = tpu.matmul %81, %5, %cst_47 {dimension_numbers = #tpu.dot_dimension_numbers<[1], [0], [0], [1], [0, 0, 1, 1], [], []>} : vector<8x16xf32>, vector<16x32xf32>, vector<8x32xf32> -> vector<8x32xf32>
    %c0_48 = arith.constant 0 : index
    %c0_49 = arith.constant 0 : index
    %83 = vector.load %arg11[%c0_48, %c0_49] : memref<32x32xf32, #tpu.memory_space<vmem>>, vector<32x32xf32>
    %cst_50 = arith.constant dense<0.000000e+00> : vector<8x32xf32>
    %84 = tpu.matmul %82, %83, %cst_50 {dimension_numbers = #tpu.dot_dimension_numbers<[1], [0], [0], [1], [0, 0, 1, 1], [], []>} : vector<8x32xf32>, vector<32x32xf32>, vector<8x32xf32> -> vector<8x32xf32>
    %85 = tpu.transpose %51, [1, 0] : vector<8x8xf32> -> vector<8x8xf32>
    %cst_51 = arith.constant dense<0.000000e+00> : vector<8x32xf32>
    %86 = tpu.matmul %85, %84, %cst_51 {dimension_numbers = #tpu.dot_dimension_numbers<[1], [0], [0], [1], [0, 0, 1, 1], [], []>} : vector<8x8xf32>, vector<8x32xf32>, vector<8x32xf32> -> vector<8x32xf32>
    %87 = vector.broadcast %49 : vector<8x1xf32> to vector<8x32xf32>
    %88 = arith.mulf %87, %86 : vector<8x32xf32>
    %cst_52 = arith.constant 0.000000e+00 : f32
    %89 = vector.broadcast %cst_52 : f32 to vector<8x32xf32>
    %90 = arith.cmpf oge, %88, %89 : vector<8x32xf32>
    %cst_53 = arith.constant 2.000000e-01 : f32
    %91 = vector.broadcast %cst_53 : f32 to vector<8x32xf32>
    %92 = arith.mulf %91, %88 : vector<8x32xf32>
    %93 = arith.select %90, %88, %92 : vector<8x32xi1>, vector<8x32xf32>
    %c0_54 = arith.constant 0 : index
    %c0_55 = arith.constant 0 : index
    %94 = vector.load %arg12[%c0_54, %c0_55] : memref<32x32xf32, #tpu.memory_space<vmem>>, vector<32x32xf32>
    %cst_56 = arith.constant dense<0.000000e+00> : vector<8x32xf32>
    %95 = tpu.matmul %93, %94, %cst_56 {dimension_numbers = #tpu.dot_dimension_numbers<[1], [0], [0], [1], [0, 0, 1, 1], [], []>} : vector<8x32xf32>, vector<32x32xf32>, vector<8x32xf32> -> vector<8x32xf32>
    %96 = tpu.transpose %51, [1, 0] : vector<8x8xf32> -> vector<8x8xf32>
    %cst_57 = arith.constant dense<0.000000e+00> : vector<8x32xf32>
    %97 = tpu.matmul %96, %95, %cst_57 {dimension_numbers = #tpu.dot_dimension_numbers<[1], [0], [0], [1], [0, 0, 1, 1], [], []>} : vector<8x8xf32>, vector<8x32xf32>, vector<8x32xf32> -> vector<8x32xf32>
    %98 = vector.broadcast %49 : vector<8x1xf32> to vector<8x32xf32>
    %99 = arith.mulf %98, %97 : vector<8x32xf32>
    %c0_58 = arith.constant 0 : index
    %c0_59 = arith.constant 0 : index
    %100 = vector.load %arg13[%c0_58, %c0_59] : memref<32x32xf32, #tpu.memory_space<vmem>>, vector<32x32xf32>
    %cst_60 = arith.constant dense<0.000000e+00> : vector<8x32xf32>
    %101 = tpu.matmul %82, %100, %cst_60 {dimension_numbers = #tpu.dot_dimension_numbers<[1], [0], [0], [1], [0, 0, 1, 1], [], []>} : vector<8x32xf32>, vector<32x32xf32>, vector<8x32xf32> -> vector<8x32xf32>
    %c0_61 = arith.constant 0 : index
    %c0_62 = arith.constant 0 : index
    %102 = vector.load %arg14[%c0_61, %c0_62] : memref<32x32xf32, #tpu.memory_space<vmem>>, vector<32x32xf32>
    %cst_63 = arith.constant dense<0.000000e+00> : vector<8x32xf32>
    %103 = tpu.matmul %99, %102, %cst_63 {dimension_numbers = #tpu.dot_dimension_numbers<[1], [0], [0], [1], [0, 0, 1, 1], [], []>} : vector<8x32xf32>, vector<32x32xf32>, vector<8x32xf32> -> vector<8x32xf32>
    %104 = arith.addf %101, %103 : vector<8x32xf32>
    %c0_64 = arith.constant 0 : index
    %c0_65 = arith.constant 0 : index
    %105 = vector.load %arg15[%c0_64, %c0_65] : memref<1x32xf32, #tpu.memory_space<vmem>>, vector<1x32xf32>
    %106 = vector.broadcast %105 : vector<1x32xf32> to vector<8x32xf32>
    %107 = arith.addf %104, %106 : vector<8x32xf32>
    %108 = math.tanh %107 : vector<8x32xf32>
    %109 = vector.shape_cast %108 : vector<8x32xf32> to vector<1x8x32xf32>
    %c0_66 = arith.constant 0 : index
    %c0_67 = arith.constant 0 : index
    %110 = vector.load %arg16[%c0_66, %c0_67] : memref<8x32xf32, #tpu.memory_space<vmem>>, vector<8x32xf32>
    %111 = vector.shape_cast %110 : vector<8x32xf32> to vector<1x8x32xf32>
    %112 = arith.mulf %109, %111 : vector<1x8x32xf32>
    %cst_68 = arith.constant dense<0.000000e+00> : vector<1x8xf32>
    %113 = vector.multi_reduction <add>, %112, %cst_68 [2] : vector<1x8x32xf32> to vector<1x8xf32>
    %c0_69 = arith.constant 0 : index
    %c0_70 = arith.constant 0 : index
    %114 = vector.load %arg17[%c0_69, %c0_70] : memref<1x8xf32, #tpu.memory_space<vmem>>, vector<1x8xf32>
    %115 = arith.addf %113, %114 : vector<1x8xf32>
    %c0_71 = arith.constant 0 : index
    %c0_72 = arith.constant 0 : index
    %c0_73 = arith.constant 0 : index
    %116 = vector.load %arg18[%c0_71, %c0_72, %c0_73] : memref<1x1x8xf32, #tpu.memory_space<vmem>>, vector<1x1x8xf32>
    %117 = vector.shape_cast %116 : vector<1x1x8xf32> to vector<1x8xf32>
    %118 = vector.shape_cast %115 : vector<1x8xf32> to vector<1x1x8xf32>
    tpu.vector_store %arg18[%c0_71, %c0_72, %c0_73], %118 {strides = array<i32>} : memref<1x1x8xf32, #tpu.memory_space<vmem>>, vector<1x1x8xf32>,
    return
  }
  func.func @transform_0(%arg0: i32) -> (i32, i32, i32) {
    %c0_i32 = arith.constant 0 : i32
    %c0_i32_0 = arith.constant 0 : i32
    %c0_i32_1 = arith.constant 0 : i32
    return %arg0, %c0_i32, %c0_i32_0 : i32, i32, i32
  }
  func.func @transform_1(%arg0: i32) -> (i32, i32, i32) {
    %c0_i32 = arith.constant 0 : i32
    %c0_i32_0 = arith.constant 0 : i32
    %c0_i32_1 = arith.constant 0 : i32
    return %arg0, %c0_i32, %c0_i32_0 : i32, i32, i32
  }
  func.func @transform_2(%arg0: i32) -> (i32, i32) {
    %c0_i32 = arith.constant 0 : i32
    %c0_i32_0 = arith.constant 0 : i32
    %c0_i32_1 = arith.constant 0 : i32
    return %c0_i32, %c0_i32_0 : i32, i32
  }
  func.func @transform_3(%arg0: i32) -> (i32, i32) {
    %c0_i32 = arith.constant 0 : i32
    %c0_i32_0 = arith.constant 0 : i32
    %c0_i32_1 = arith.constant 0 : i32
    return %c0_i32, %c0_i32_0 : i32, i32
  }
  func.func @transform_4(%arg0: i32) -> (i32, i32) {
    %c0_i32 = arith.constant 0 : i32
    %c0_i32_0 = arith.constant 0 : i32
    %c0_i32_1 = arith.constant 0 : i32
    return %c0_i32, %c0_i32_0 : i32, i32
  }
  func.func @transform_5(%arg0: i32) -> (i32, i32, i32) {
    %c0_i32 = arith.constant 0 : i32
    %c0_i32_0 = arith.constant 0 : i32
    %c0_i32_1 = arith.constant 0 : i32
    %c0_i32_2 = arith.constant 0 : i32
    return %c0_i32, %c0_i32_0, %c0_i32_1 : i32, i32, i32
  }
  func.func @transform_6(%arg0: i32) -> (i32, i32) {
    %c0_i32 = arith.constant 0 : i32
    %c0_i32_0 = arith.constant 0 : i32
    %c0_i32_1 = arith.constant 0 : i32
    return %c0_i32, %c0_i32_0 : i32, i32
  }
  func.func @transform_7(%arg0: i32) -> (i32, i32) {
    %c0_i32 = arith.constant 0 : i32
    %c0_i32_0 = arith.constant 0 : i32
    %c0_i32_1 = arith.constant 0 : i32
    return %c0_i32, %c0_i32_0 : i32, i32
  }
  func.func @transform_8(%arg0: i32) -> (i32, i32) {
    %c0_i32 = arith.constant 0 : i32
    %c0_i32_0 = arith.constant 0 : i32
    %c0_i32_1 = arith.constant 0 : i32
    return %c0_i32, %c0_i32_0 : i32, i32
  }
  func.func @transform_9(%arg0: i32) -> (i32, i32) {
    %c0_i32 = arith.constant 0 : i32
    %c0_i32_0 = arith.constant 0 : i32
    %c0_i32_1 = arith.constant 0 : i32
    return %c0_i32, %c0_i32_0 : i32, i32
  }
  func.func @transform_10(%arg0: i32) -> (i32, i32) {
    %c0_i32 = arith.constant 0 : i32
    %c0_i32_0 = arith.constant 0 : i32
    %c0_i32_1 = arith.constant 0 : i32
    return %c0_i32, %c0_i32_0 : i32, i32
  }
  func.func @transform_11(%arg0: i32) -> (i32, i32) {
    %c0_i32 = arith.constant 0 : i32
    %c0_i32_0 = arith.constant 0 : i32
    %c0_i32_1 = arith.constant 0 : i32
    return %c0_i32, %c0_i32_0 : i32, i32
  }
  func.func @transform_12(%arg0: i32) -> (i32, i32) {
    %c0_i32 = arith.constant 0 : i32
    %c0_i32_0 = arith.constant 0 : i32
    %c0_i32_1 = arith.constant 0 : i32
    return %c0_i32, %c0_i32_0 : i32, i32
  }
  func.func @transform_13(%arg0: i32) -> (i32, i32) {
    %c0_i32 = arith.constant 0 : i32
    %c0_i32_0 = arith.constant 0 : i32
    %c0_i32_1 = arith.constant 0 : i32
    return %c0_i32, %c0_i32_0 : i32, i32
  }
  func.func @transform_14(%arg0: i32) -> (i32, i32) {
    %c0_i32 = arith.constant 0 : i32
    %c0_i32_0 = arith.constant 0 : i32
    %c0_i32_1 = arith.constant 0 : i32
    return %c0_i32, %c0_i32_0 : i32, i32
  }
  func.func @transform_15(%arg0: i32) -> (i32, i32) {
    %c0_i32 = arith.constant 0 : i32
    %c0_i32_0 = arith.constant 0 : i32
    %c0_i32_1 = arith.constant 0 : i32
    return %c0_i32, %c0_i32_0 : i32, i32
  }
  func.func @transform_16(%arg0: i32) -> (i32, i32) {
    %c0_i32 = arith.constant 0 : i32
    %c0_i32_0 = arith.constant 0 : i32
    %c0_i32_1 = arith.constant 0 : i32
    return %c0_i32, %c0_i32_0 : i32, i32
  }
  func.func @transform_17(%arg0: i32) -> (i32, i32, i32) {
    %c0_i32 = arith.constant 0 : i32
    %c0_i32_0 = arith.constant 0 : i32
    %c0_i32_1 = arith.constant 0 : i32
    return %arg0, %c0_i32, %c0_i32_0 : i32, i32, i32
  }
  func.func @transform_18(%arg0: i32) -> (i32, i32, i32) {
    %c0_i32 = arith.constant 0 : i32
    %c0_i32_0 = arith.constant 0 : i32
    %c0_i32_1 = arith.constant 0 : i32
    return %arg0, %c0_i32, %c0_i32_0 : i32, i32, i32
  }
  func.func @transform_19(%arg0: i32) -> (i32, i32, i32) {
    %c0_i32 = arith.constant 0 : i32
    %c0_i32_0 = arith.constant 0 : i32
    %c0_i32_1 = arith.constant 0 : i32
    return %arg0, %c0_i32, %c0_i32_0 : i32, i32, i32
  }
  func.func @transform_20(%arg0: i32) -> (i32, i32, i32) {
    %c0_i32 = arith.constant 0 : i32
    %c0_i32_0 = arith.constant 0 : i32
    %c0_i32_1 = arith.constant 0 : i32
    return %arg0, %c0_i32, %c0_i32_0 : i32, i32, i32
  }
}

</mosaic_0001>

<bundles_post_ra>
// kernel: resnet_kmeans_forward.3
= control target key start
LH: loop header
LB: loop body
LE: loop exit
PB: predicated region body
PF: predicated region fallthrough
CT: control target
= control target key end

     0   :  { %vm63_vm0 = vcmask 1041408   ;;  %v303_v1 = vmov 0   ;;  %v304_v2 = vmov 0.0   ;;  %s348_s0 = inlined_call_operand.vmem [shape: s32[2,1], index: 0, kind: input, shape index: {}]   ;;  %s349_s1 = inlined_call_operand.vmem [shape: f32[2,32], index: 1, kind: input, shape index: {}]   ;;  %s350_s2 = inlined_call_operand.vmem [shape: f32[4,32], index: 2, kind: input, shape index: {}]   ;;  %s351_s3 = inlined_call_operand.vmem [shape: f32[4,1], index: 3, kind: input, shape index: {}]   ;;  %s352_s4 = inlined_call_operand.hbm [shape: f32[4,32], index: 4, kind: output, shape index: {}]  }
   0x1   :  { %v18_v0 = vld [vmem:[%s348_s0] sm:$0x3]  ;;  %277 = vset.pattern.permute.xlu0 %v303_v1  ;;  %262 = vmatprep.subr.mxu0 %v304_v2 }
   0x2   :  { %v137_v3 = vld [vmem:[%s349_s1] sm:$0x3] }
   0x3   :  { %9 = vsyncpa [#allocation3], 0  ;;  %22 = vperm.xlu0 %277, %v18_v0   ;;  %267 = vmatprep.subr.mxu1 %v304_v2  ;;  %v305_v4 = vmov 1.0   ;;  %vm306_vm1 = vmmov 0   ;;  %v19_v5 = vlaneseq  ;;  %vm59_vm3 = vcmask 15360  }
   0x4   :  { %263 = vmatpush3.msk.msra.mxu0 %vm63_vm0, %v305_v4  ;;  %264 = vmatprep.mubr.msk.f32.mxu0 %vm306_vm1, %v304_v2  ;;  %v211_v10 = vld [vmem:[%s351_s3] sm:$0xf]  ;;  %s307_s3 = smov [#allocation2]   ;;  %vm237_vm6 = vcmask 257024  }
   0x5   :  { %268 = vmatpush3.msk.msra.mxu1 %vm63_vm0, %v137_v3  ;;  %269 = vmatprep.mubr.msk.f32.mxu1 %vm306_vm1, %v304_v2  ;;  %v20_v6 = vand.u32 127, %v19_v5  ;;  %v215_v19 = vld [vmem:[%s350_s2] sm:$0xf]  ;;  %s245_s21 = sshll.u32 %s307_s3, 4  ;;  %s246_s21 = int_to_ptr.vmem [resolvable:$true] %s245_s21 }
   0x6   :  { %278 = vset.pattern.permute.xlu1 %v303_v1  ;;  %s281_s22 = scalar_lea.vmem %s246_s21, 64  ;;  %p286_p1 = scmp.lt.s32.totalorder %s246_s21, %s246_s21 }
   0x7   :  { %p282_p0 = scmp.ne.s32.totalorder %s246_s21, %s281_s22  ;;  %p287_p2 = scmp.lt.s32.totalorder %s281_s22, %s281_s22 }
   0x9   :  { %p288_p3 = por %p287_p2, %p286_p1 }
   0xb   :  { %p289_p4 = pnand %p288_p3, %p282_p0 }
  0x7e   :  { %v23_v7 = vpop.permute.xlu0 %22 }
  0x7f   :  { %vm24_vm2 = vcmp.eq.s32.totalorder %v20_v6, %v23_v7 }
  0x80   :  { %v253_v8 = vsel %vm24_vm2, 1.0, %v304_v2 }
  0x81   :  { %27 = vxpose.xlu0.b32.start.end [1/1] (short) (narrow) %v253_v8, 8 }
  0xfd   :  { %v43_v9 = vpop.trf.xlu0 }
  0xfe   :  { %265 = vmatmul.mubr.msk.f32.vlgmr.msra.gmra.mxu0 %vm59_vm3, %v43_v9  ;;  %270 = vmatmul.mubr.msk.f32.vlgmr.msra.gmra.mxu1 %vm59_vm3, %v43_v9 }
 0x1be   :  { %v133_v11 = vpop.f32.mrf.mxu0  ;;  %v207_v12 = vpop.f32.mrf.mxu1 }
 0x1bf   :  { %v212_v13 = vadd.f32 %v211_v10, %v133_v11  ;;  %vm230_vm5 = vcmp.gt.f32.partialorder %v133_v11, 0.0 }
 0x1c0   :  { %v266_v14 = vpop.f32.mrf.mxu0  ;;  %v271_v15 = vpop.f32.mrf.mxu1  ;;  %v231_v17 = vsel %vm230_vm5, 1, %v303_v1 }
 0x1c1   :  { %vm213_vm4 = vcmp.gt.f32.partialorder %v212_v13, 0.0 }
 0x1c2   :  { %v214_v16 = vsel %vm213_vm4, %v212_v13, 1.0 }
 0x1c3   :  { %225 = vperm.xlu1 %278, %v214_v16  }
 0x1c7   :  { %218 = vperm.xlu1 %278, %v211_v10  }
 0x1cb   :  { %233 = vperm.xlu1 %278, %v231_v17  }
 0x23e   :  { %v226_v18 = vpop.permute.xlu1 %225 }
 0x23f   :  { %279 = vrcp.f32 %v226_v18 }
 0x242   :  { %v219_v20 = vpop.permute.xlu1 %218 }
 0x243   :  { %v221_v21 = vmul.f32 %v219_v20, %v215_v19 }
 0x245   :  { %v222_v22 = vadd.f32 %v221_v21, %v207_v12 }
 0x246   :  { %v234_v23 = vpop.permute.xlu1 %233 }
 0x247   :  { %vm235_vm7 = vcmp.eq.s32.totalorder %v234_v23, 1 }
 0x24c   :  { %v280_v24 = vpop.eup %279 }
 0x24d   :  { %v229_v25 = vmul.f32 %v280_v24, %v222_v22 }
 0x24f   :  { %v236_v26 = vsel %vm235_vm7, %v229_v25, %v215_v19 }
 0x250   :  { %238 = vst.msk [vmem:[#allocation2] sm:$0xf] %vm237_vm6, %v236_v26 }
 0x251   :  { %292 = shalt.err (!%p289_p4)
}
 0x252   :  { %248 = dma.vmem_to_hbm [thread:$0]  %s246_s21, 64, %s352_s4, [#allocation3]  }
 0x253   :  { %301 = dma.done.wait [#allocation3], 64  }
 0x254   :  { %302 = vsyncadd [#allocation3], 4294967232 }
 0x255   :  { %252 = vsyncpa [#allocation3], 1 }

// kernel: resnet_kmeans_forward.2
= control target key start
LH: loop header
LB: loop body
LE: loop exit
PB: predicated region body
PF: predicated region fallthrough
CT: control target
= control target key end

     0   :  { %s3781_s0 = inlined_call_operand.vmem [shape: f32[2,16,48], index: 0, kind: input, shape index: {}]   ;;  %s3782_s1 = inlined_call_operand.vmem [shape: f32[2,8,16], index: 1, kind: input, shape index: {}]   ;;  %s3783_s2 = inlined_call_operand.vmem [shape: f32[48,32], index: 2, kind: input, shape index: {}]   ;;  %s3784_s3 = inlined_call_operand.vmem [shape: f32[32,4], index: 3, kind: input, shape index: {}]   ;;  %s3785_s4 = inlined_call_operand.vmem [shape: f32[1,4], index: 4, kind: input, shape index: {}]   ;;  %s3786_s5 = inlined_call_operand.vmem [shape: f32[4,8,8], index: 5, kind: input, shape index: {}]   ;;  %s3787_s6 = inlined_call_operand.vmem [shape: f32[32,32], index: 6, kind: input, shape index: {}]   ;;  %s3788_s7 = inlined_call_operand.vmem [shape: f32[16,32], index: 7, kind: input, shape index: {}]   ;;  %s3789_s8 = inlined_call_operand.vmem [shape: f32[1,32], index: 8, kind: input, shape index: {}]   ;;  %s3790_s9 = inlined_call_operand.<no memory space> [shape: f32[1,1], index: 9, kind: input, shape index: {}]   ;;  %s3791_s10 = inlined_call_operand.vmem [shape: f32[32,32], index: 10, kind: input, shape index: {}]   ;;  %s3792_s11 = inlined_call_operand.vmem [shape: f32[32,32], index: 11, kind: input, shape index: {}]   ;;  %s3793_s12 = inlined_call_operand.vmem [shape: f32[32,32], index: 12, kind: input, shape index: {}]   ;;  %s3794_s13 = inlined_call_operand.vmem [shape: f32[32,32], index: 13, kind: input, shape index: {}]   ;;  %s3795_s14 = inlined_call_operand.vmem [shape: f32[1,32], index: 14, kind: input, shape index: {}]   ;;  %s3796_s15 = inlined_call_operand.vmem [shape: f32[8,32], index: 15, kind: input, shape index: {}]   ;;  %s3797_s16 = inlined_call_operand.vmem [shape: f32[1,8], index: 16, kind: input, shape index: {}]   ;;  %s3798_s17 = inlined_call_operand.hbm [shape: f32[2,1,8], index: 17, kind: output, shape index: {0}]   ;;  %s3799_s18 = inlined_call_operand.hbm [shape: f32[2,8,8], index: 18, kind: output, shape index: {1}]   ;;  %s3800_s19 = inlined_call_operand.vmem [shape: s32[2,1,1], index: 19, kind: output, shape index: {2}]   ;;  %s3801_s20 = inlined_call_operand.vmem [shape: f32[2,1,32], index: 20, kind: output, shape index: {3}]  }
   0x1   :  { %3810 = sst [smem:[#allocation14_spill]] %s3781_s0  ;;  %v26_v0 = vstv %s3790_s9 }
   0x2   :  { %3811 = sst [smem:[#allocation15_spill]] %s3782_s1  ;;  %27 = vst [vmem:[#allocation2] sm:$0x1] %v26_v0 }
   0x3   :  { %3812 = sst [smem:[#allocation16_spill]] %s3783_s2 }
   0x4   :  { %3813 = sst [smem:[#allocation17_spill]] %s3784_s3 }
   0x5   :  { %3814 = sst [smem:[#allocation18_spill]] %s3785_s4 }
   0x6   :  { %3815 = sst [smem:[#allocation19_spill]] %s3786_s5 }
   0x7   :  { %3816 = sst [smem:[#allocation20_spill]] %s3787_s6 }
   0x8   :  { %3817 = sst [smem:[#allocation21_spill]] %s3788_s7 }
   0x9   :  { %28 = vsyncpa [#allocation4], 0 }
   0xa   :  { %30 = vsyncpa [#allocation4 + $0x1], 0 }
   0xb   :  { %31 = vsyncpa [#allocation6], 0 }
   0xc   :  { %33 = vsyncpa [#allocation6 + $0x1], 0  ;;  %s3129_s23 = smov 0   ;;  %s3131_s24 = smov 0  }
   0xd   :  { %s3133_s2 = smov 0   ;;  %s3135_s25 = smov 0  }
   0xe LB: > { %3818 = sst [smem:[#allocation9_spill]] %s3001_s23  ;;  %s3150_s9 = sadd.s32 4294967295, %s3013_s25   ;;  %s3013_s25 = sphi %s3135_s25, %s3835_s25   ;;  %s3009_s2 = sphi %s3133_s2, %s3837_s2   ;;  %s3005_s24 = sphi %s3131_s24, %s3839_s24   ;;  %s3001_s23 = sphi %s3129_s23, %s3838_s23  }
   0xf   : > { %3819 = sst [smem:[#allocation10_spill]] %s3009_s2  ;;  %s2618_s3 = sadd.s32 4294967294, %s3013_s25  }
  0x10   : > { %s3154_s26 = sadd.s32 1, %s3013_s25   ;;  %s413_s27 = sadd.s32 1, %s3009_s2 }
  0x11   : > { %3820 = sst [smem:[#allocation11_spill]] %s3154_s26  ;;  %s410_s28 = ssub.s32 %s3013_s25, %s3154_s26 }
  0x12   : > { %p423_p0 = scmp.ne.s32.totalorder %s3009_s2, %s3005_s24  ;;  %p411_p1 = scmp.eq.s32.totalorder %s410_s28, 0 }
  0x13   : > { %p424_p2 = scmp.eq.s32.totalorder %s3150_s9, 1  ;;  %p429_p3 = scmp.ne.s32.totalorder %s3005_s24, %s3001_s23 }
  0x14   : > { %p430_p4 = scmp.eq.s32.totalorder %s2618_s3, 1  ;;  %p2621_p7 = scmp.ge.s32.totalorder %s3013_s25, 1 }
  0x15   : > { %s3165_s4 = scalar_select %p411_p1, %s3009_s2, %s413_s27  }
  0x16   : > { %p3167_p5 = por %p424_p2, %p423_p0  ;;  %p3171_p6 = por %p430_p4, %p429_p3 }
  0x17   : > { %3821 = sst [smem:[#allocation12_spill]] %s3165_s4  ;;  %p586_p8 = scmp.lt.s32.totalorder %s3013_s25, 3 }
  0x18   : > { %s3823_s30 = scalar_select %p3171_p6, 1, 0 }
  0x19   : > { %p587_p9 = pnand %p2621_p7, %p586_p8 }
  0x1a   : > { %3824 = sst [smem:[#allocation13_spill]] %s3823_s30  ;;  %p658_p10 = scmp.lt.s32.totalorder (!%p587_p9), %s3150_s9, 1 }
  0x1b   : > { %590 = sbr.rel (%p587_p9) target bundleno = 3139 (0xc43), region = 88  ;;  %s3825_s1 = sld [smem:[#allocation16_spill]] (!%p587_p9) }
  0x1c   : > { %s3826_s26 = sld [smem:[#allocation14_spill]] (!%p587_p9)  ;;  %s3646_s3 = sand.u32 (!%p587_p9), 1, %s3005_s24  }
  0x1d   : > { %s3827_s7 = sld [smem:[#allocation21_spill]] (!%p587_p9) }
  0x1e   : > { %s3828_s27 = sld [smem:[#allocation15_spill]] (!%p587_p9) }
  0x1f   : > { %s3830_s6 = sld [smem:[#allocation20_spill]] (!%p587_p9) }
  0x20   : > { %v3015_v3 = vmov 0.0   ;;  %s3189_s4 = scalar_select %p658_p10, %s3150_s9, 1  ;;  %vm681_vm0 = vcmask 392192   ;;  %vm3016_vm1 = vmmov 0   ;;  %vm1007_vm2 = vcmask 130048  }
  0x21   : > { %v680_v1 = vld [vmem:[%s3825_s1 + $0x28] sm:$0xff]  ;;  %v679_v2 = vld [vmem:[%s3825_s1 + $0x20] sm:$0xff]  ;;  %2713 = vmatprep.subr.mxu1 %v3015_v3  ;;  %v678_v4 = vld [vmem:[%s3825_s1 + $0x18] sm:$0xff]  ;;  %2721 = vmatprep.mubr.msk.f32.mxu1 %vm3016_vm1, %v3015_v3  ;;  %vm765_vm3 = vcmask 261120   ;;  %vm777_vm4 = vcmask 253952   ;;  %v3017_v37 = vmov 0   ;;  %v864_v38 = vlaneseq }
  0x22   : > { %2698 = vmatprep.subr.mxu0 %v680_v1  ;;  %v677_v5 = vld [vmem:[%s3825_s1 + $0x10] sm:$0xff]  ;;  %s2648_s22 = sshll.u32 %s3189_s4, 4  ;;  %v676_v6 = vld [vmem:[%s3825_s1 + $0x8] sm:$0xff]  ;;  %v675_v8 = vld [vmem:[%s3825_s1] sm:$0xff]  ;;  %s672_s21 = scalar_lea.vmem %s3801_s20, %s3189_s4  ;;  %2851 = vset.pattern.permute.xlu0 %v3017_v37  ;;  %v3018_v39 = vmov 1966171168  }
  0x23   : > { %2699 = vmatpush3.msra.mxu0 %v680_v1  ;;  %s662_s30 = scalar_lea.vmem %s3826_s26, %s2648_s22  ;;  %v1006_v10 = vld [vmem:[%s3827_s7 + $0x8] sm:$0xff]  ;;  %v1005_v11 = vld [vmem:[%s3827_s7] sm:$0xff]  ;;  %s2625_s22 = sshll.u32 %s3189_s4, 3  ;;  %2852 = vset.pattern.permute.xlu1 %v3017_v37  ;;  %v1084_v40 = vunpack.c.l.s4 %v3018_v39  ;;  %v3272_v41 = vshrl.u32 %v864_v38, 7  ;;  %vm1325_vm5 = vcmask 130112   ;;  %vm1390_vm6 = vcmask 1041409  }
  0x24   : > { %2700 = vmatprep.subr.mxu0 %v679_v2  ;;  %v673_v7 = vld [vmem:[%s662_s30] sm:$0xff]  ;;  %v674_v9 = vld [vmem:[%s662_s30 + $0x8] sm:$0xff]  ;;  %s666_s28 = scalar_lea.vmem %s3828_s27, %s2625_s22  ;;  %s3829_s26 = sld [smem:[#allocation17_spill]]  ;;  %vm1392_vm7 = vcmask 1042434   ;;  %vm1394_vm8 = vcmask 1043459   ;;  %vm1396_vm9 = vcmask 1044484  }
  0x25   : > { %2701 = vmatpush3.msra.mxu0 %v679_v2  ;;  %2710 = vmatprep.mubr.msk.f32.mxu0 %vm681_vm0, %v673_v7  ;;  %v1004_v12 = vld [vmem:[%s666_s28] sm:$0xff]  ;;  %v922_v17 = vld [vmem:[%s3830_s6 + $0x18] sm:$0xff]  ;;  %v921_v32 = vld [vmem:[%s3830_s6 + $0x10] sm:$0xff]  ;;  %v1085_v42 = vunpack.c.0.s8 %v1084_v40  ;;  %v3278_v50 = vsub.s32 0, %v3272_v41  ;;  %vm1398_vm10 = vcmask 1045509   ;;  %vm1400_vm11 = vcmask 1046534   ;;  %s669_s27 = scalar_lea.vmem %s3800_s19, %s3189_s4 }
  0x26   : > { %2702 = vmatprep.subr.mxu0 %v678_v4  ;;  %v920_v33 = vld [vmem:[%s3830_s6 + $0x8] sm:$0xff]  ;;  %v919_v34 = vld [vmem:[%s3830_s6] sm:$0xff]  ;;  %vm1402_vm12 = vcmask 1047559   ;;  %s3831_s30 = sld [smem:[#allocation18_spill]]  ;;  %vm866_vm13 = vcmask 24576   ;;  %s3019_s22 = smov [#allocation5]  }
  0x27   : > { %2703 = vmatpush3.msra.mxu0 %v678_v4  ;;  %v1088_v43 = vsub.s32 %v1085_v42, %v3272_v41  ;;  %s3832_s5 = sld [smem:[#allocation19_spill]]  ;;  %s2927_s4 = sshll.u32 %s3019_s22, 4  ;;  %s2928_s4 = int_to_ptr.vmem [resolvable:$false] %s2927_s4 }
  0x28   : > { %2704 = vmatprep.subr.mxu0 %v677_v5 }
  0x29   : > { %2705 = vmatpush3.msra.mxu0 %v677_v5 }
  0x2a   : > { %2706 = vmatprep.subr.mxu0 %v676_v6  ;;  %v782_v13 = vld [vmem:[%s3829_s26 + $0x18] sm:$0xff]  ;;  %v781_v14 = vld [vmem:[%s3829_s26 + $0x10] sm:$0xff]  ;;  %v780_v15 = vld [vmem:[%s3829_s26 + $0x8] sm:$0xff] }
  0x2b   : > { %2707 = vmatpush3.msra.mxu0 %v676_v6  ;;  %2714 = vmatpush3.msra.mxu1 %v782_v13  ;;  %v779_v16 = vld [vmem:[%s3829_s26] sm:$0xff] }
  0x2c   : > { %2708 = vmatprep.subr.mxu0 %v675_v8  ;;  %2715 = vmatprep.subr.mxu1 %v3015_v3 }
  0x2d   : > { %2709 = vmatpush3.msra.mxu0 %v675_v8  ;;  %2716 = vmatpush3.msra.mxu1 %v781_v14 }
  0x2e   : > { %2711 = vmatmul.mubr.msk.f32.vlgmr.msra.gmra.mxu0 %vm681_vm0, %v674_v9  ;;  %2735 = vmatprep.subr.mxu0 %v3015_v3  ;;  %vm887_vm0 = vcmask 0  }
  0x2f   : > { %2736 = vmatpush3.msra.mxu0 %v1006_v10  ;;  %2739 = vmatprep.mubr.msk.f32.mxu0 %vm3016_vm1, %v3015_v3 }
  0x30   : > { %2737 = vmatprep.subr.mxu0 %v3015_v3  ;;  %2717 = vmatprep.subr.mxu1 %v3015_v3 }
  0x31   : > { %2738 = vmatpush3.msra.mxu0 %v1005_v11  ;;  %2718 = vmatpush3.msra.mxu1 %v780_v15  ;;  %v3289_v15 = vld [vmem:[%s3789_s8] ss:$0 sm:$0xff] }
  0x32   : > { %2742 = vmatprep.subr.mxu0 %v3015_v3  ;;  %2740 = vmatmul.mubr.msk.f32.vlgmr.msra.gmra.mxu0 %vm1007_vm2, %v1004_v12 }
  0x33   : > { %2746 = vmatprep.mubr.msk.f32.mxu0 %vm3016_vm1, %v3015_v3  ;;  %2719 = vmatprep.subr.mxu1 %v3015_v3 }
  0x34   : > { %2720 = vmatpush3.msra.mxu1 %v779_v16 }
  0x35   : > { %2724 = vmatprep.subr.mxu1 %v922_v17 }
  0xee   : > { %v2712_v18 = vpop.f32.mrf.mxu0 }
  0xef   : > { %v764_v19 = vmax.f32 %v2712_v18, 0.0 }
  0xf0   : > { %v754_v20 = vpop.f32.mrf.mxu0 }
  0xf1   : > { %v763_v21 = vmax.f32 %v754_v20, 0.0  ;;  %2743 = vmatpush3.msra.mxu0 %v764_v19  ;;  %v767_v22 = vsel %vm765_vm3, %v764_v19, 0.0 }
  0xf2   : > { %2744 = vmatprep.subr.mxu0 %v3015_v3  ;;  %v1077_v35 = vpop.f32.mrf.mxu0 }
  0xf3   : > { %v766_v23 = vsel %vm765_vm3, %v763_v21, 0.0  ;;  %2745 = vmatpush3.msra.mxu0 %v763_v21  ;;  %v1089_v44 = vrot.slane %v1077_v35, %v1088_v43  ;;  %v1082_v48 = vcombine.high %v1077_v35, %v1077_v35 }
  0xf4   : > { %v768_v24 = vadd.f32 %v767_v22, %v766_v23  ;;  %2760 = vmatprep.subr.mxu0 %v3015_v3  ;;  %v2741_v36 = vpop.f32.mrf.mxu0 }
  0xf5   : > { %v1097_v45 = vcombine.high %v1089_v44, %v1089_v44  ;;  %v1105_v46 = vrot.slane %v1089_v44, %v1088_v43  ;;  %v1096_v54 = vrot.slane %v1082_v48, %v1088_v43 }
  0xf6   : > { %v769_v25 = vrot.slane %v768_v24, 4 }
  0xf7   : > { %v1119_v47 = vrot.slane %v1097_v45, %v1088_v43  ;;  %v1127_v51 = vcombine.high %v1105_v46, %v1105_v46  ;;  %v1134_v55 = vrot.slane %v1105_v46, %v3278_v50  ;;  %v1098_v59 = vcombine.high %v1096_v54, %v1096_v54 }
  0xf8   : > { %v770_v26 = vadd.f32 %v769_v25, %v768_v24  ;;  %v1112_v61 = vrot.slane %v1096_v54, %v1088_v43 }
  0xf9   : > { %v1129_v53 = vcombine.high %v1119_v47, %v1119_v47  ;;  %v1138_v56 = vrot.slane %v1119_v47, %v3278_v50  ;;  %v1142_v57 = vrot.slane %v1127_v51, %v3278_v50  ;;  %v1126_v7 = vrot.slane %v1098_v59, %v1088_v43 }
  0xfa   : > { %v771_v27 = vrot.slane %v770_v26, 2  ;;  %v1150_v2 = vrot.slane %v1112_v61, %v3278_v50  ;;  %v1128_v11 = vcombine.high %v1112_v61, %v1112_v61 }
  0xfb   : > { %v1146_v58 = vrot.slane %v1129_v53, %v3278_v50  ;;  %v1154_v8 = vrot.slane %v1126_v7, %v3278_v50  ;;  %v1130_v14 = vcombine.high %v1126_v7, %v1126_v7 }
  0xfc   : > { %v772_v28 = vadd.f32 %v771_v27, %v770_v26  ;;  %v1158_v16 = vrot.slane %v1128_v11, %v3278_v50 }
  0xfd   : > { %v1162_v23 = vrot.slane %v1130_v14, %v3278_v50  ;;  %v2633_v14 = vld [vmem:[#allocation2] ss:$0 sm:$0xff] }
  0xfe   : > { %v773_v29 = vrot.slane %v772_v28, 1 }
 0x100   : > { %v774_v30 = vadd.f32 %v773_v29, %v772_v28 }
 0x102   : > { %v3252_v31 = vmul.f32 0.0625, %v774_v30 }
 0x104   : > { %778 = vst.msk [vmem:[%s672_s21] sm:$0x1] %vm777_vm4, %v3252_v31  ;;  %2722 = vmatmul.mubr.msk.f32.vlgmr.msra.gmra.mxu1 %vm765_vm3, %v3252_v31  ;;  %s2443_s21 = scalar_lea.sflag [#allocation6], %s3646_s3 }
 0x105   : > { %2725 = vmatpush3.msra.mxu1 %v922_v17  ;;  %2732 = vmatprep.mubr.msk.f32.mxu1 %vm765_vm3, %v763_v21 }
 0x106   : > { %2726 = vmatprep.subr.mxu1 %v921_v32 }
 0x107   : > { %2727 = vmatpush3.msra.mxu1 %v921_v32 }
 0x108   : > { %2728 = vmatprep.subr.mxu1 %v920_v33 }
 0x109   : > { %2729 = vmatpush3.msra.mxu1 %v920_v33 }
 0x10a   : > { %2730 = vmatprep.subr.mxu1 %v919_v34 }
 0x10b   : > { %2731 = vmatpush3.msra.mxu1 %v919_v34 }
 0x10c   : > { %2733 = vmatmul.mubr.msk.f32.vlgmr.msra.gmra.mxu1 %vm765_vm3, %v764_v19  ;;  %2749 = vmatprep.subr.mxu1 %v3015_v3 }
 0x10d   : > { %2757 = vmatprep.mubr.msk.f32.mxu1 %vm3016_vm1, %v3015_v3 }
 0x1c4   : > { %v3275_v49 = vpop.f32.mrf.mxu1 }
 0x1c6   : > { %v2723_v52 = vpop.f32.mrf.mxu1 }
 0x1cc   : > { %v2734_v60 = vpop.f32.mrf.mxu1 }
 0x1cd   : > { %v1174_v62 = vmul.f32 %v2734_v60, %v1138_v56  ;;  %v1172_v63 = vmul.f32 %v2734_v60, %v1134_v55  ;;  %v1176_v0 = vmul.f32 %v2734_v60, %v1142_v57  ;;  %v1178_v5 = vmul.f32 %v2734_v60, %v1146_v58 }
 0x1ce   : > { %v995_v1 = vpop.f32.mrf.mxu1  ;;  %v1180_v9 = vmul.f32 %v2734_v60, %v1150_v2  ;;  %v1182_v12 = vmul.f32 %v2734_v60, %v1154_v8  ;;  %v1184_v28 = vmul.f32 %v2734_v60, %v1158_v16  ;;  %v1186_v37 = vmul.f32 %v2734_v60, %v1162_v23 }
 0x1cf   : > { %2853 = vtanh.f32 %v1174_v62  ;;  %v1171_v4 = vmul.f32 %v1134_v55, %v995_v1  ;;  %v1175_v6 = vmul.f32 %v1142_v57, %v995_v1  ;;  %v1177_v10 = vmul.f32 %v1146_v58, %v995_v1 }
 0x1d0   : > { %2855 = vtanh.f32 %v1172_v63  ;;  %v1179_v13 = vmul.f32 %v1150_v2, %v995_v1  ;;  %v1173_v17 = vmul.f32 %v1138_v56, %v995_v1  ;;  %v1181_v19 = vmul.f32 %v1154_v8, %v995_v1 }
 0x1d1   : > { %2857 = vtanh.f32 %v1176_v0  ;;  %v1183_v33 = vmul.f32 %v1158_v16, %v995_v1  ;;  %v1185_v43 = vmul.f32 %v1162_v23, %v995_v1 }
 0x1d2   : > { %2859 = vtanh.f32 %v1171_v4 }
 0x1d3   : > { %2861 = vtanh.f32 %v1178_v5 }
 0x1d4   : > { %2863 = vtanh.f32 %v1175_v6 }
 0x1d5   : > { %2865 = vtanh.f32 %v1180_v9 }
 0x1d6   : > { %2867 = vtanh.f32 %v1177_v10 }
 0x1d7   : > { %2869 = vtanh.f32 %v1182_v12 }
 0x1d8   : > { %2871 = vtanh.f32 %v1179_v13 }
 0x1d9   : > { %2873 = vtanh.f32 %v1173_v17 }
 0x1da   : > { %2875 = vtanh.f32 %v1181_v19 }
 0x1db   : > { %2877 = vtanh.f32 %v1184_v28 }
 0x1dc   : > { %v2854_v18 = vpop.eup %2853  ;;  %2879 = vtanh.f32 %v1183_v33 }
 0x1dd   : > { %v2856_v20 = vpop.eup %2855  ;;  %v1213_v21 = vmul.f32 %v2854_v18, %v3289_v15  ;;  %2881 = vtanh.f32 %v1186_v37 }
 0x1de   : > { %v2858_v22 = vpop.eup %2857  ;;  %v1211_v24 = vmul.f32 %v2856_v20, %v3289_v15  ;;  %2883 = vtanh.f32 %v1185_v43 }
 0x1df   : > { %v2860_v25 = vpop.eup %2859  ;;  %v1235_v26 = vsel %vm765_vm3, %v1213_v21, 0.0  ;;  %v1215_v27 = vmul.f32 %v2858_v22, %v3289_v15 }
 0x1e0   : > { %v2862_v29 = vpop.eup %2861  ;;  %1236 = vadd.xlane.f32.xlu1 %v1235_v26  ;;  %v1229_v30 = vsel %vm765_vm3, %v1211_v24, 0.0  ;;  %v1210_v32 = vmul.f32 %v2860_v25, %v3289_v15 }
 0x1e1   : > { %v2864_v34 = vpop.eup %2863  ;;  %1230 = vadd.xlane.f32.xlu0 %v1229_v30  ;;  %v1241_v35 = vsel %vm765_vm3, %v1215_v27, 0.0  ;;  %v1217_v36 = vmul.f32 %v2862_v29, %v3289_v15  ;;  %v3326_v27 = vand.u32 127, %v864_v38 }
 0x1e2   : > { %v2866_v39 = vpop.eup %2865  ;;  %v1226_v40 = vsel %vm765_vm3, %v1210_v32, 0.0  ;;  %v1214_v42 = vmul.f32 %v2864_v34, %v3289_v15 }
 0x1e3   : > { %v2868_v44 = vpop.eup %2867  ;;  %v1247_v45 = vsel %vm765_vm3, %v1217_v36, 0.0  ;;  %v1219_v46 = vmul.f32 %v2866_v39, %v3289_v15  ;;  %v1320_v29 = vadd.s32 4294967288, %v3326_v27  ;;  %v3331_v33 = vsub.s32 %v3326_v27, %v3272_v41 }
 0x1e4   : > { %1242 = vadd.xlane.f32.xlu1 %v1241_v35  ;;  %v2870_v47 = vpop.eup %2869  ;;  %v1238_v48 = vsel %vm765_vm3, %v1214_v42, 0.0  ;;  %v1216_v51 = vmul.f32 %v2868_v44, %v3289_v15 }
 0x1e5   : > { %1227 = vadd.xlane.f32.xlu0 %v1226_v40  ;;  %v2872_v52 = vpop.eup %2871  ;;  %v1253_v53 = vsel %vm765_vm3, %v1219_v46, 0.0  ;;  %v1221_v54 = vmul.f32 %v2870_v47, %v3289_v15  ;;  %v3334_v34 = vsub.s32 %v1320_v29, %v3272_v41 }
 0x1e6   : > { %v2874_v55 = vpop.eup %2873  ;;  %v1244_v56 = vsel %vm765_vm3, %v1216_v51, 0.0  ;;  %v1218_v57 = vmul.f32 %v2872_v52, %v3289_v15 }
 0x1e7   : > { %v2876_v58 = vpop.eup %2875  ;;  %v1259_v59 = vsel %vm765_vm3, %v1221_v54, 0.0  ;;  %v1212_v60 = vmul.f32 %v2874_v55, %v3289_v15 }
 0x1e8   : > { %1248 = vadd.xlane.f32.xlu1 %v1247_v45  ;;  %v2878_v61 = vpop.eup %2877  ;;  %v1250_v62 = vsel %vm765_vm3, %v1218_v57, 0.0  ;;  %v1220_v63 = vmul.f32 %v2876_v58, %v3289_v15 }
 0x1e9   : > { %1239 = vadd.xlane.f32.xlu0 %v1238_v48  ;;  %v2880_v0 = vpop.eup %2879  ;;  %v1232_v1 = vsel %vm765_vm3, %v1212_v60, 0.0  ;;  %v1223_v2 = vmul.f32 %v2878_v61, %v3289_v15 }
 0x1ea   : > { %v2882_v4 = vpop.eup %2881  ;;  %v1256_v5 = vsel %vm765_vm3, %v1220_v63, 0.0  ;;  %v1222_v6 = vmul.f32 %v2880_v0, %v3289_v15 }
 0x1eb   : > { %v2884_v7 = vpop.eup %2883  ;;  %v1265_v8 = vsel %vm765_vm3, %v1223_v2, 0.0  ;;  %v1225_v9 = vmul.f32 %v2882_v4, %v3289_v15 }
 0x1ec   : > { %1254 = vadd.xlane.f32.xlu1 %v1253_v53  ;;  %v1262_v10 = vsel %vm765_vm3, %v1222_v6, 0.0  ;;  %v1224_v11 = vmul.f32 %v2884_v7, %v3289_v15 }
 0x1ed   : > { %1245 = vadd.xlane.f32.xlu0 %v1244_v56  ;;  %v1271_v12 = vsel %vm765_vm3, %v1225_v9, 0.0 }
 0x1ee   : > { %v1268_v13 = vsel %vm765_vm3, %v1224_v11, 0.0 }
 0x1f0   : > { %1260 = vadd.xlane.f32.xlu1 %v1259_v59 }
 0x1f1   : > { %1251 = vadd.xlane.f32.xlu0 %v1250_v62 }
 0x1f4   : > { %1233 = vadd.xlane.f32.xlu1 %v1232_v1 }
 0x1f5   : > { %1257 = vadd.xlane.f32.xlu0 %v1256_v5 }
 0x1f8   : > { %1266 = vadd.xlane.f32.xlu1 %v1265_v8 }
 0x1f9   : > { %1263 = vadd.xlane.f32.xlu0 %v1262_v10 }
 0x1fc   : > { %1272 = vadd.xlane.f32.xlu1 %v1271_v12 }
 0x1fd   : > { %1269 = vadd.xlane.f32.xlu0 %v1268_v13 }
 0x213   : > { %1281 = vperm.xlu0 %2851, %v2633_v14  }
 0x269   : > { %v1237_v16 = vpop.xlane.xlu1 %1236 }
 0x26a   : > { %v1231_v17 = vpop.xlane.xlu0 %1230 }
 0x26d   : > { %v1243_v19 = vpop.xlane.xlu1 %1242 }
 0x26e   : > { %v1228_v18 = vpop.xlane.xlu0 %1227 }
 0x271   : > { %v1249_v21 = vpop.xlane.xlu1 %1248 }
 0x272   : > { %v1240_v20 = vpop.xlane.xlu0 %1239 }
 0x275   : > { %v1255_v24 = vpop.xlane.xlu1 %1254 }
 0x276   : > { %v1246_v22 = vpop.xlane.xlu0 %1245 }
 0x279   : > { %v1261_v15 = vpop.xlane.xlu1 %1260 }
 0x27a   : > { %v1252_v23 = vpop.xlane.xlu0 %1251 }
 0x27d   : > { %v1234_v28 = vpop.xlane.xlu1 %1233 }
 0x27e   : > { %v1258_v25 = vpop.xlane.xlu0 %1257 }
 0x281   : > { %v1267_v32 = vpop.xlane.xlu1 %1266 }
 0x282   : > { %v1264_v26 = vpop.xlane.xlu0 %1263 }
 0x285   : > { %v1273_v53 = vpop.xlane.xlu1 %1272 }
 0x286   : > { %v1270_v30 = vpop.xlane.xlu0 %1269 }
 0x28e   : > { %v1282_v35 = vpop.permute.xlu0 %1281 }
 0x28f   : > { %v3336_v36 = vadd.f32 %v1282_v35, %v1228_v18  ;;  %v3338_v37 = vadd.f32 %v1282_v35, %v1231_v17  ;;  %v3340_v39 = vadd.f32 %v1282_v35, %v1234_v28  ;;  %v3342_v38 = vadd.f32 %v1282_v35, %v1237_v16 }
 0x290   : > { %v3344_v40 = vadd.f32 %v1282_v35, %v1240_v20  ;;  %v3346_v42 = vadd.f32 %v1282_v35, %v1243_v19  ;;  %v3348_v43 = vadd.f32 %v1282_v35, %v1246_v22  ;;  %v3350_v44 = vadd.f32 %v1282_v35, %v1249_v21 }
 0x291   : > { %v3352_v45 = vadd.f32 %v1282_v35, %v1252_v23  ;;  %v3354_v46 = vadd.f32 %v1282_v35, %v1255_v24  ;;  %v3356_v47 = vadd.f32 %v1282_v35, %v1258_v25  ;;  %v3358_v48 = vadd.f32 %v1282_v35, %v1261_v15 }
 0x292   : > { %v3360_v51 = vadd.f32 %v1282_v35, %v1264_v26  ;;  %v3362_v52 = vadd.f32 %v1282_v35, %v1267_v32  ;;  %v1319_v54 = vrot.slane %v3336_v36, %v3331_v33  ;;  %v1324_v55 = vrot.slane %v3338_v37, %v3334_v34 }
 0x293   : > { %v1330_v56 = vrot.slane %v3340_v39, %v3331_v33  ;;  %v1334_v57 = vrot.slane %v3342_v38, %v3334_v34  ;;  %v3372_v58 = vadd.f32 %v1282_v35, %v1270_v30  ;;  %v3374_v59 = vadd.f32 %v1282_v35, %v1273_v53 }
 0x294   : > { %v1339_v60 = vrot.slane %v3344_v40, %v3331_v33  ;;  %v1343_v61 = vrot.slane %v3346_v42, %v3334_v34  ;;  %v1326_v62 = vsel %vm1325_vm5, %v1324_v55, %v1319_v54  ;;  %v1348_v0 = vrot.slane %v3348_v43, %v3331_v33 }
 0x295   : > { %v1335_v63 = vsel %vm1325_vm5, %v1334_v57, %v1330_v56  ;;  %v1352_v1 = vrot.slane %v3350_v44, %v3334_v34  ;;  %v1357_v4 = vrot.slane %v3352_v45, %v3331_v33  ;;  %v1361_v5 = vrot.slane %v3354_v46, %v3334_v34 }
 0x296   : > { %v1344_v2 = vsel %vm1325_vm5, %v1343_v61, %v1339_v60  ;;  %v1366_v6 = vrot.slane %v3356_v47, %v3331_v33  ;;  %v1370_v7 = vrot.slane %v3358_v48, %v3334_v34  ;;  %v1375_v8 = vrot.slane %v3360_v51, %v3331_v33 }
 0x297   : > { %v1379_v9 = vrot.slane %v3362_v52, %v3334_v34  ;;  %v1391_v10 = vsel %vm1390_vm6, %v1335_v63, %v1326_v62  ;;  %v1353_v11 = vsel %vm1325_vm5, %v1352_v1, %v1348_v0  ;;  %v1384_v12 = vrot.slane %v3372_v58, %v3331_v33 }
 0x298   : > { %v1388_v13 = vrot.slane %v3374_v59, %v3334_v34  ;;  %v1393_v14 = vsel %vm1392_vm7, %v1344_v2, %v1391_v10  ;;  %v1362_v16 = vsel %vm1325_vm5, %v1361_v5, %v1357_v4  ;;  %v1371_v18 = vsel %vm1325_vm5, %v1370_v7, %v1366_v6 }
 0x299   : > { %v1395_v17 = vsel %vm1394_vm8, %v1353_v11, %v1393_v14  ;;  %v1380_v20 = vsel %vm1325_vm5, %v1379_v9, %v1375_v8  ;;  %v1423_v15 = vsub.s32 3, %v3272_v41  ;;  %v1415_v28 = vsub.s32 1, %v3272_v41 }
 0x29a   : > { %v1397_v19 = vsel %vm1396_vm9, %v1362_v16, %v1395_v17  ;;  %v1389_v22 = vsel %vm1325_vm5, %v1388_v13, %v1384_v12  ;;  %v1427_v32 = vsub.s32 4, %v3272_v41  ;;  %v1431_v56 = vsub.s32 5, %v3272_v41 }
 0x29b   : > { %v1399_v21 = vsel %vm1398_vm10, %v1371_v18, %v1397_v19  ;;  %v1435_v63 = vsub.s32 6, %v3272_v41  ;;  %v1439_v5 = vsub.s32 7, %v3272_v41 }
 0x29c   : > { %v1401_v23 = vsel %vm1400_vm11, %v1380_v20, %v1399_v21 }
 0x29d   : > { %v1403_v24 = vsel %vm1402_vm12, %v1389_v22, %v1401_v23 }
 0x29e   : > { %v1405_v25 = vsel %vm1007_vm2, %v1403_v24, -inf }
 0x29f   : > { %1406 = vmax.xlane.f32.xlu1 %v1405_v25 }
 0x328   : > { %v1407_v26 = vpop.xlane.xlu1 %1406 }
 0x329   : > { %v1412_v29 = vrot.slane %v1407_v26, %v3278_v50  ;;  %v1424_v35 = vrot.slane %v1407_v26, %v1423_v15  ;;  %v1416_v53 = vrot.slane %v1407_v26, %v1415_v28  ;;  %v1428_v57 = vrot.slane %v1407_v26, %v1427_v32 }
 0x32a   : > { %v1432_v0 = vrot.slane %v1407_v26, %v1431_v56  ;;  %v1440_v9 = vrot.slane %v1407_v26, %v1439_v5 }
 0x32b   : > { %v1449_v30 = vsub.f32 %v3336_v36, %v1412_v29  ;;  %v1450_v54 = vsub.f32 %v3338_v37, %v1412_v29  ;;  %v1456_v60 = vsub.f32 %v3350_v44, %v1424_v35  ;;  %v1419_v36 = vsub.s32 2, %v3272_v41 }
 0x32c   : > { %v1451_v61 = vsub.f32 %v3340_v39, %v1416_v53  ;;  %v1458_v37 = vsub.f32 %v3354_v46, %v1428_v57  ;;  %v1452_v4 = vsub.f32 %v3342_v38, %v1416_v53  ;;  %v1436_v39 = vrot.slane %v1407_v26, %v1435_v63 }
 0x32d   : > { %v1465_v55 = vmul.f32 1.442695, %v1449_v30  ;;  %v1467_v62 = vmul.f32 1.442695, %v1450_v54  ;;  %v1479_v1 = vmul.f32 1.442695, %v1456_v60  ;;  %v1420_v2 = vrot.slane %v1407_v26, %v1419_v36 }
 0x32e   : > { %v1469_v44 = vmul.f32 1.442695, %v1451_v61  ;;  %v1460_v6 = vsub.f32 %v3358_v48, %v1432_v0  ;;  %v1483_v7 = vmul.f32 1.442695, %v1458_v37  ;;  %v1471_v46 = vmul.f32 1.442695, %v1452_v4 }
 0x32f   : > { %2885 = vpow2.f32 %v1465_v55  ;;  %v1453_v8 = vsub.f32 %v3344_v40, %v1420_v2  ;;  %v1462_v38 = vsub.f32 %v3362_v52, %v1436_v39  ;;  %v1454_v11 = vsub.f32 %v3346_v42, %v1420_v2 }
 0x330   : > { %2887 = vpow2.f32 %v1467_v62  ;;  %v1487_v10 = vmul.f32 1.442695, %v1460_v6  ;;  %v1464_v48 = vsub.f32 %v3374_v59, %v1440_v9  ;;  %v1455_v14 = vsub.f32 %v3348_v43, %v1424_v35 }
 0x331   : > { %2889 = vpow2.f32 %v1479_v1  ;;  %v1473_v12 = vmul.f32 1.442695, %v1453_v8  ;;  %v1491_v40 = vmul.f32 1.442695, %v1462_v38  ;;  %v1475_v16 = vmul.f32 1.442695, %v1454_v11 }
 0x332   : > { %2891 = vpow2.f32 %v1469_v44  ;;  %v1495_v42 = vmul.f32 1.442695, %v1464_v48  ;;  %v1457_v18 = vsub.f32 %v3352_v45, %v1428_v57  ;;  %v1477_v19 = vmul.f32 1.442695, %v1455_v14 }
 0x333   : > { %2893 = vpow2.f32 %v1483_v7  ;;  %v1459_v59 = vsub.f32 %v3356_v47, %v1432_v0  ;;  %v1461_v23 = vsub.f32 %v3360_v51, %v1436_v39  ;;  %v1463_v26 = vsub.f32 %v3372_v58, %v1440_v9 }
 0x334   : > { %2895 = vpow2.f32 %v1471_v46  ;;  %v1481_v21 = vmul.f32 1.442695, %v1457_v18 }
 0x335   : > { %2897 = vpow2.f32 %v1487_v10  ;;  %v1485_v24 = vmul.f32 1.442695, %v1459_v59  ;;  %v1489_v29 = vmul.f32 1.442695, %v1461_v23  ;;  %v1493_v35 = vmul.f32 1.442695, %v1463_v26 }
 0x336   : > { %2899 = vpow2.f32 %v1473_v12 }
 0x337   : > { %2901 = vpow2.f32 %v1491_v40 }
 0x338   : > { %2903 = vpow2.f32 %v1475_v16 }
 0x339   : > { %2905 = vpow2.f32 %v1495_v42 }
 0x33a   : > { %2907 = vpow2.f32 %v1477_v19 }
 0x33b   : > { %2909 = vpow2.f32 %v1481_v21 }
 0x33c   : > { %v3448_v13 = vpop.eup %2885  ;;  %2911 = vpow2.f32 %v1485_v24 }
 0x33d   : > { %1514 = vperm.xlu1 %2852, %v3448_v13   ;;  %v3453_v17 = vpop.eup %2887  ;;  %2913 = vpow2.f32 %v1489_v29 }
 0x33e   : > { %v3456_v52 = vpop.eup %2889  ;;  %2915 = vpow2.f32 %v1493_v35 }
 0x33f   : > { %v3459_v20 = vpop.eup %2891  ;;  %1535 = vperm.xlu0 %2851, %v3456_v52  }
 0x340   : > { %v3463_v43 = vpop.eup %2893 }
 0x341   : > { %1517 = vperm.xlu1 %2852, %v3453_v17   ;;  %v3466_v22 = vpop.eup %2895 }
 0x342   : > { %v3470_v45 = vpop.eup %2897 }
 0x343   : > { %1541 = vperm.xlu0 %2851, %v3463_v43   ;;  %v3473_v25 = vpop.eup %2899 }
 0x344   : > { %v3477_v47 = vpop.eup %2901 }
 0x345   : > { %1520 = vperm.xlu1 %2852, %v3459_v20   ;;  %v3480_v30 = vpop.eup %2903 }
 0x346   : > { %v3484_v51 = vpop.eup %2905 }
 0x347   : > { %1547 = vperm.xlu0 %2851, %v3470_v45   ;;  %v3486_v53 = vpop.eup %2907 }
 0x348   : > { %v3490_v58 = vpop.eup %2909 }
 0x349   : > { %1523 = vperm.xlu1 %2852, %v3466_v22   ;;  %v3493_v54 = vpop.eup %2911 }
 0x34a   : > { %v3496_v55 = vpop.eup %2913 }
 0x34b   : > { %1553 = vperm.xlu0 %2851, %v3477_v47   ;;  %v2916_v57 = vpop.eup %2915 }
 0x34d   : > { %1526 = vperm.xlu1 %2852, %v3473_v25  }
 0x34f   : > { %1559 = vperm.xlu0 %2851, %v3484_v51  }
 0x351   : > { %1529 = vperm.xlu1 %2852, %v3480_v30  }
 0x355   : > { %1532 = vperm.xlu1 %2852, %v3486_v53  }
 0x359   : > { %1538 = vperm.xlu1 %2852, %v3490_v58  }
 0x35d   : > { %1544 = vperm.xlu1 %2852, %v3493_v54  }
 0x361   : > { %1550 = vperm.xlu1 %2852, %v3496_v55  }
 0x365   : > { %1556 = vperm.xlu1 %2852, %v2916_v57  }
 0x3b8   : > { %v1515_v60 = vpop.permute.xlu1 %1514 }
 0x3b9   : > { %v1564_v14 = vrot.slane %v1515_v60, %v3331_v33 }
 0x3ba   : > { %v1536_v37 = vpop.permute.xlu0 %1535 }
 0x3bb   : > { %v1595_v40 = vrot.slane %v1536_v37, %v3334_v34 }
 0x3bc   : > { %v1518_v61 = vpop.permute.xlu1 %1517 }
 0x3bd   : > { %v1568_v38 = vrot.slane %v1518_v61, %v3334_v34 }
 0x3be   : > { %v1542_v2 = vpop.permute.xlu0 %1541 }
 0x3bf   : > { %v1604_v18 = vrot.slane %v1542_v2, %v3334_v34  ;;  %v1569_v21 = vsel %vm1325_vm5, %v1568_v38, %v1564_v14 }
 0x3c0   : > { %v1521_v62 = vpop.permute.xlu1 %1520 }
 0x3c1   : > { %v1573_v10 = vrot.slane %v1521_v62, %v3331_v33 }
 0x3c2   : > { %v1548_v39 = vpop.permute.xlu0 %1547 }
 0x3c3   : > { %v1613_v23 = vrot.slane %v1548_v39, %v3334_v34 }
 0x3c4   : > { %v1524_v0 = vpop.permute.xlu1 %1523 }
 0x3c5   : > { %v1577_v7 = vrot.slane %v1524_v0, %v3334_v34 }
 0x3c6   : > { %v1554_v8 = vpop.permute.xlu0 %1553 }
 0x3c7   : > { %v1578_v16 = vsel %vm1325_vm5, %v1577_v7, %v1573_v10  ;;  %v1622_v29 = vrot.slane %v1554_v8, %v3334_v34 }
 0x3c8   : > { %v1527_v1 = vpop.permute.xlu1 %1526  ;;  %v1633_v35 = vsel %vm1390_vm6, %v1578_v16, %v1569_v21 }
 0x3c9   : > { %v1582_v12 = vrot.slane %v1527_v1, %v3331_v33 }
 0x3ca   : > { %v1560_v60 = vpop.permute.xlu0 %1559 }
 0x3cc   : > { %v1530_v4 = vpop.permute.xlu1 %1529 }
 0x3cd   : > { %v1586_v46 = vrot.slane %v1530_v4, %v3334_v34  ;;  %v1631_v4 = vrot.slane %v1560_v60, %v3334_v34 }
 0x3cf   : > { %v1587_v19 = vsel %vm1325_vm5, %v1586_v46, %v1582_v12 }
 0x3d0   : > { %v1533_v44 = vpop.permute.xlu1 %1532  ;;  %v1634_v62 = vsel %vm1392_vm7, %v1587_v19, %v1633_v35 }
 0x3d1   : > { %v1591_v11 = vrot.slane %v1533_v44, %v3331_v33 }
 0x3d3   : > { %v1596_v24 = vsel %vm1325_vm5, %v1595_v40, %v1591_v11 }
 0x3d4   : > { %v1539_v6 = vpop.permute.xlu1 %1538  ;;  %v1635_v37 = vsel %vm1394_vm8, %v1596_v24, %v1634_v62 }
 0x3d5   : > { %v1600_v48 = vrot.slane %v1539_v6, %v3331_v33 }
 0x3d7   : > { %v1605_v61 = vsel %vm1325_vm5, %v1604_v18, %v1600_v48 }
 0x3d8   : > { %v1545_v9 = vpop.permute.xlu1 %1544  ;;  %v1636_v44 = vsel %vm1396_vm9, %v1605_v61, %v1635_v37 }
 0x3d9   : > { %v1609_v42 = vrot.slane %v1545_v9, %v3331_v33 }
 0x3db   : > { %v1614_v0 = vsel %vm1325_vm5, %v1613_v23, %v1609_v42 }
 0x3dc   : > { %v1551_v59 = vpop.permute.xlu1 %1550  ;;  %v1637_v6 = vsel %vm1398_vm10, %v1614_v0, %v1636_v44 }
 0x3dd   : > { %v1618_v26 = vrot.slane %v1551_v59, %v3331_v33 }
 0x3df   : > { %v1623_v1 = vsel %vm1325_vm5, %v1622_v29, %v1618_v26 }
 0x3e0   : > { %v1557_v2 = vpop.permute.xlu1 %1556  ;;  %v1638_v8 = vsel %vm1400_vm11, %v1623_v1, %v1637_v6 }
 0x3e1   : > { %v1627_v39 = vrot.slane %v1557_v2, %v3331_v33 }
 0x3e3   : > { %v1632_v7 = vsel %vm1325_vm5, %v1631_v4, %v1627_v39 }
 0x3e4   : > { %v1639_v46 = vsel %vm1402_vm12, %v1632_v7, %v1638_v8 }
 0x3e5   : > { %v1641_v9 = vsel %vm1007_vm2, %v1639_v46, 0.0 }
 0x3e6   : > { %1642 = vadd.xlane.f32.xlu1 %v1641_v9 }
 0x46f   : > { %v1643_v38 = vpop.xlane.xlu1 %1642 }
 0x470   : > { %2917 = vrcp.f32 %v1643_v38 }
 0x47d   : > { %v2918_v10 = vpop.eup %2917 }
 0x47e   : > { %v1665_v11 = vrot.slane %v2918_v10, %v1427_v32  ;;  %v1649_v12 = vrot.slane %v2918_v10, %v3278_v50  ;;  %v1677_v14 = vrot.slane %v2918_v10, %v1439_v5  ;;  %v1653_v18 = vrot.slane %v2918_v10, %v1415_v28 }
 0x480   : > { %v1695_v48 = vmul.f32 %v3463_v43, %v1665_v11  ;;  %v1686_v40 = vmul.f32 %v3448_v13, %v1649_v12  ;;  %v1700_v16 = vmul.f32 %v2916_v57, %v1677_v14  ;;  %v1687_v42 = vmul.f32 %v3453_v17, %v1649_v12 }
 0x481   : > { %v1688_v32 = vmul.f32 %v3459_v20, %v1653_v18  ;;  %v1689_v43 = vmul.f32 %v3466_v22, %v1653_v18  ;;  %v1657_v13 = vrot.slane %v2918_v10, %v1419_v36  ;;  %v1661_v17 = vrot.slane %v2918_v10, %v1423_v15 }
 0x482   : > { %1746 = vperm.xlu1 %2852, %v1695_v48   ;;  %1719 = vperm.xlu0 %2851, %v1686_v40   ;;  %v1694_v22 = vmul.f32 %v3490_v58, %v1665_v11  ;;  %v1669_v36 = vrot.slane %v2918_v10, %v1431_v56 }
 0x483   : > { %v1690_v5 = vmul.f32 %v3473_v25, %v1657_v13  ;;  %v1691_v57 = vmul.f32 %v3480_v30, %v1657_v13  ;;  %v1692_v28 = vmul.f32 %v3486_v53, %v1661_v17  ;;  %v1693_v20 = vmul.f32 %v3456_v52, %v1661_v17 }
 0x484   : > { %v1696_v25 = vmul.f32 %v3493_v54, %v1669_v36  ;;  %v856_v30 = vmul.f32 %v3252_v31, %v3252_v31  ;;  %v1697_v15 = vmul.f32 %v3470_v45, %v1669_v36  ;;  %v1673_v53 = vrot.slane %v2918_v10, %v1435_v63 }
 0x485   : > { %v1701_v54 = vmul.f32 %v3484_v51, %v1677_v14 }
 0x486   : > { %1761 = vperm.xlu1 %2852, %v1700_v16   ;;  %1722 = vperm.xlu0 %2851, %v1687_v42   ;;  %v857_v52 = vsel %vm765_vm3, %v856_v30, 0.0  ;;  %v1698_v58 = vmul.f32 %v3496_v55, %v1673_v53  ;;  %v1699_v56 = vmul.f32 %v3477_v47, %v1673_v53  ;;  %v1918_v53 = vld [vmem:[%s3791_s10 + $0x8] sm:$0xff] }
 0x48a   : > { %1725 = vperm.xlu0 %2851, %v1688_v32   ;;  %v860_v32 = vld [vmem:[%s3831_s30] sm:$0x1]  ;;  %s2645_s30 = sshll.u32 %s3150_s9, 7 }
 0x48b   : > { %s2473_s23 = scalar_lea.hbm %s3799_s18, %s2645_s30 }
 0x48e   : > { %1728 = vperm.xlu0 %2851, %v1689_v43  }
 0x492   : > { %1731 = vperm.xlu0 %2851, %v1690_v5  }
 0x496   : > { %1734 = vperm.xlu0 %2851, %v1691_v57  }
 0x49a   : > { %1737 = vperm.xlu0 %2851, %v1692_v28   ;;  %v862_v28 = vmul.f32 2.0, %v3275_v49  ;;  %v1920_v49 = vld [vmem:[%s3791_s10 + $0x18] sm:$0xff] }
 0x49b   : > { %2750 = vmatpush3.msra.mxu1 %v1920_v49  ;;  %v2256_v49 = vld [vmem:[%s3794_s13 + $0x8] sm:$0xff] }
 0x49c   : > { %2751 = vmatprep.subr.mxu1 %v3015_v3 }
 0x49e   : > { %1740 = vperm.xlu0 %2851, %v1693_v20  }
 0x4a2   : > { %1743 = vperm.xlu0 %2851, %v1694_v22  }
 0x4a6   : > { %1749 = vperm.xlu0 %2851, %v1696_v25  }
 0x4aa   : > { %858 = vadd.xlane.f32.xlu1 %v857_v52  ;;  %1752 = vperm.xlu0 %2851, %v1697_v15   ;;  %v1919_v15 = vld [vmem:[%s3791_s10 + $0x10] sm:$0xff]  ;;  %v1917_v52 = vld [vmem:[%s3791_s10] sm:$0xff] }
 0x4ab   : > { %2752 = vmatpush3.msra.mxu1 %v1919_v15  ;;  %v2255_v15 = vld [vmem:[%s3794_s13] sm:$0xff] }
 0x4ac   : > { %2753 = vmatprep.subr.mxu1 %v3015_v3 }
 0x4ad   : > { %2754 = vmatpush3.msra.mxu1 %v1918_v53 }
 0x4ae   : > { %1755 = vperm.xlu0 %2851, %v1698_v58   ;;  %2755 = vmatprep.subr.mxu1 %v3015_v3 }
 0x4af   : > { %2756 = vmatpush3.msra.mxu1 %v1917_v52 }
 0x4b0   : > { %2776 = vmatprep.subr.mxu1 %v3015_v3 }
 0x4b2   : > { %1758 = vperm.xlu0 %2851, %v1699_v56  }
 0x4b6   : > { %1764 = vperm.xlu0 %2851, %v1701_v54  }
 0x4fd   : > { %v1720_v31 = vpop.permute.xlu0 %1719  ;;  %v1747_v35 = vpop.permute.xlu1 %1746 }
 0x4fe   : > { %v1769_v1 = vrot.slane %v1720_v31, %v3331_v33  ;;  %v1809_v39 = vrot.slane %v1747_v35, %v3334_v34 }
 0x501   : > { %v1723_v19 = vpop.permute.xlu0 %1722  ;;  %v1762_v10 = vpop.permute.xlu1 %1761 }
 0x502   : > { %v1773_v51 = vrot.slane %v1723_v19, %v3334_v34  ;;  %v1832_v43 = vrot.slane %v1762_v10, %v3331_v33 }
 0x504   : > { %v1774_v8 = vsel %vm1325_vm5, %v1773_v51, %v1769_v1  ;;  %v897_v51 = vld [vmem:[%s3832_s5] sm:$0xff] }
 0x505   : > { %v1726_v59 = vpop.permute.xlu0 %1725 }
 0x506   : > { %v1778_v61 = vrot.slane %v1726_v59, %v3331_v33 }
 0x509   : > { %v1729_v45 = vpop.permute.xlu0 %1728 }
 0x50a   : > { %v1782_v55 = vrot.slane %v1729_v45, %v3334_v34 }
 0x50c   : > { %v1783_v2 = vsel %vm1325_vm5, %v1782_v55, %v1778_v61  ;;  %v898_v61 = vld [vmem:[%s3832_s5 + $0x8] sm:$0xff] }
 0x50d   : > { %v1732_v21 = vpop.permute.xlu0 %1731  ;;  %v1838_v11 = vsel %vm1390_vm6, %v1783_v2, %v1774_v8 }
 0x50e   : > { %v1787_v0 = vrot.slane %v1732_v21, %v3331_v33 }
 0x511   : > { %v1735_v41 = vpop.permute.xlu0 %1734 }
 0x512   : > { %v1791_v47 = vrot.slane %v1735_v41, %v3334_v34 }
 0x514   : > { %v1792_v6 = vsel %vm1325_vm5, %v1791_v47, %v1787_v0 }
 0x515   : > { %v1738_v63 = vpop.permute.xlu0 %1737  ;;  %v1839_v40 = vsel %vm1392_vm7, %v1792_v6, %v1838_v11 }
 0x516   : > { %v1796_v4 = vrot.slane %v1738_v63, %v3331_v33 }
 0x519   : > { %v1741_v23 = vpop.permute.xlu0 %1740 }
 0x51a   : > { %v1800_v62 = vrot.slane %v1741_v23, %v3334_v34 }
 0x51c   : > { %v1801_v46 = vsel %vm1325_vm5, %v1800_v62, %v1796_v4  ;;  %v899_v62 = vld [vmem:[%s3832_s5 + $0x10] sm:$0xff] }
 0x51d   : > { %v1744_v24 = vpop.permute.xlu0 %1743  ;;  %v1840_v16 = vsel %vm1394_vm8, %v1801_v46, %v1839_v40  ;;  %v2105_v40 = vld [vmem:[%s3792_s11 + $0x10] sm:$0xff] }
 0x51e   : > { %v1805_v37 = vrot.slane %v1744_v24, %v3331_v33 }
 0x520   : > { %v1810_v12 = vsel %vm1325_vm5, %v1809_v39, %v1805_v37 }
 0x521   : > { %v1750_v26 = vpop.permute.xlu0 %1749  ;;  %v1841_v13 = vsel %vm1396_vm9, %v1810_v12, %v1840_v16  ;;  %v2106_v12 = vld [vmem:[%s3792_s11 + $0x18] sm:$0xff]  ;;  %v2103_v16 = vld [vmem:[%s3792_s11] sm:$0xff] }
 0x522   : > { %v1814_v9 = vrot.slane %v1750_v26, %v3331_v33 }
 0x525   : > { %v1753_v29 = vpop.permute.xlu0 %1752 }
 0x526   : > { %v1818_v44 = vrot.slane %v1753_v29, %v3334_v34 }
 0x528   : > { %v1819_v14 = vsel %vm1325_vm5, %v1818_v44, %v1814_v9 }
 0x529   : > { %v1756_v60 = vpop.permute.xlu0 %1755  ;;  %v1842_v57 = vsel %vm1398_vm10, %v1819_v14, %v1841_v13  ;;  %v2104_v14 = vld [vmem:[%s3792_s11 + $0x8] sm:$0xff]  ;;  %v2254_v13 = vld [vmem:[%s3793_s12 + $0x18] sm:$0xff] }
 0x52a   : > { %v1823_v48 = vrot.slane %v1756_v60, %v3331_v33 }
 0x52d   : > { %v1759_v7 = vpop.permute.xlu0 %1758 }
 0x52e   : > { %v1827_v38 = vrot.slane %v1759_v7, %v3334_v34 }
 0x530   : > { %v1828_v42 = vsel %vm1325_vm5, %v1827_v38, %v1823_v48 }
 0x531   : > { %v1765_v18 = vpop.permute.xlu0 %1764  ;;  %v1843_v20 = vsel %vm1400_vm11, %v1828_v42, %v1842_v57  ;;  %v2253_v57 = vld [vmem:[%s3793_s12 + $0x10] sm:$0xff] }
 0x532   : > { %v1836_v5 = vrot.slane %v1765_v18, %v3334_v34 }
 0x533   : > { %v859_v17 = vpop.xlane.xlu1 %858 }
 0x534   : > { %v1837_v22 = vsel %vm1325_vm5, %v1836_v5, %v1832_v43  ;;  %v861_v36 = vadd.f32 %v860_v32, %v859_v17  ;;  %v2252_v17 = vld [vmem:[%s3793_s12 + $0x8] sm:$0xff] }
 0x535   : > { %v1844_v25 = vsel %vm1402_vm12, %v1837_v22, %v1843_v20  ;;  %v2258_v22 = vld [vmem:[%s3794_s13 + $0x18] sm:$0xff] }
 0x536   : > { %2747 = vmatmul.mubr.msk.f32.vlgmr.msra.gmra.mxu0 %vm1007_vm2, %v1844_v25  ;;  %v863_v30 = vsub.f32 %v861_v36, %v862_v28  ;;  %vm905_vm2 = vcmask 64512   ;;  %v2251_v28 = vld [vmem:[%s3793_s12] sm:$0xff]  ;;  %v2257_v25 = vld [vmem:[%s3794_s13 + $0x10] sm:$0xff] }
 0x537   : > { %2762 = vmatprep.mubr.msk.f32.mxu0 %vm3016_vm1, %v3015_v3 }
 0x538   : > { %v867_v34 = vsel %vm866_vm13, %v863_v30, inf }
 0x539   : > { %868 = vmin.xlane.f32.xlu0 %v867_v34 }
 0x5c2   : > { %v869_v58 = vpop.xlane.xlu0 %868 }
 0x5c3   : > { %vm870_vm14 = vcmp.eq.f32.partialorder %v863_v30, %v869_v58 }
 0x5c4   : > { %v871_v56 = vsel %vm870_vm14, %v3326_v27, 4 }
 0x5c5   : > { %v872_v54 = vsel %vm866_vm13, %v871_v56, 2147483647 }
 0x5c6   : > { %v874_v31 = vshra.s32 %v872_v54, 16  ;;  %v873_v21 = vand.u32 65535, %v872_v54  ;;  %v2641_v54 = vld [vmem:[%s3795_s14] ss:$0 sm:$0xff] }
 0x5c8   : > { %v876_v19 = vcvt.s32.f32 %v874_v31  ;;  %v875_v63 = vcvt.s32.f32 %v873_v21 }
 0x5ca   : > { %877 = vmin.xlane.f32.xlu0 %v876_v19 }
 0x5f6   : > { %v3621_v59 = vpop.f32.mrf.mxu0 }
 0x5f7   : > { %2758 = vmatmul.mubr.msk.f32.vlgmr.msra.gmra.mxu1 %vm765_vm3, %v3621_v59 }
 0x5f8   : > { %v2748_v45 = vpop.f32.mrf.mxu0  ;;  %2778 = vmatprep.mubr.msk.f32.mxu1 %vm3016_vm1, %v3015_v3 }
 0x653   : > { %v878_v41 = vpop.xlane.xlu0 %877 }
 0x654   : > { %vm879_vm15 = vcmp.eq.f32.partialorder %v876_v19, %v878_v41  ;;  %v884_v26 = vcvt.f32.s32 %v878_v41 }
 0x655   : > { %v880_v27 = vsel %vm879_vm15, %v875_v63, inf  ;;  %v2642_v63 = vld [vmem:[%s3797_s16] ss:$0 sm:$0xff] }
 0x656   : > { %881 = vmin.xlane.f32.xlu1 %v880_v27  ;;  %v885_v55 = vshll.u32 %v884_v26, 16 }
 0x6b7   : > { %v1990_v23 = vpop.f32.mrf.mxu1 }
 0x6b8   : > { %2761 = vmatpush3.msra.mxu0 %v1990_v23 }
 0x6b9   : > { %v2759_v24 = vpop.f32.mrf.mxu1  ;;  %2765 = vmatprep.subr.mxu0 %v3015_v3 }
 0x6df   : > { %v882_v29 = vpop.xlane.xlu1 %881 }
 0x6e0   : > { %v883_v35 = vcvt.f32.s32 %v882_v29 }
 0x6e2   : > { %v886_v47 = vadd.s32 %v885_v55, %v883_v35 }
 0x6e4   : > { %888 = vst.msk [vmem:[%s669_s27] sm:$0x1] %vm887_vm0, %v886_v47  ;;  %v892_v60 = vrot.slane %v886_v47, %v3278_v50  ;;  %v900_v50 = vld [vmem:[%s3832_s5 + $0x18] sm:$0xff]  ;;  %s2622_s27 = sshll.u32 %s3646_s3, 3  ;;  %s2929_s5 = scalar_lea.vmem %s2928_s4, 256 }
 0x6e5   : > { %s3654_s28 = scalar_lea.vmem [#allocation5], %s2622_s27 }
 0x6e6   : > { %vm893_vm4 = vcmp.eq.s32.totalorder %v892_v60, 0  ;;  %vm894_vm5 = vcmp.eq.s32.totalorder %v892_v60, 1  ;;  %vm895_vm6 = vcmp.eq.s32.totalorder %v892_v60, 2  ;;  %vm896_vm7 = vcmp.eq.s32.totalorder %v892_v60, 3  ;;  %s2475_s27 = sshll.u32 %s3654_s28, 4  ;;  %s2476_s27 = int_to_ptr.vmem [resolvable:$true] %s2475_s27 }
 0x6e7   : > { %v901_v0 = vsel %vm893_vm4, %v897_v51, 0.0  ;;  %v902_v37 = vsel %vm894_vm5, %v898_v61, 0.0  ;;  %v903_v1 = vsel %vm895_vm6, %v899_v62, 0.0  ;;  %v904_v44 = vsel %vm896_vm7, %v900_v50, 0.0  ;;  %s2923_s1 = scalar_lea.vmem %s2476_s27, 128  ;;  %p2930_p0 = scmp.lt.s32.totalorder %s2476_s27, %s2928_s4 }
 0x6e8   : > { %v906_v2 = vsel %vm905_vm2, %v901_v0, 0.0  ;;  %v907_v4 = vsel %vm905_vm2, %v902_v37, 0.0  ;;  %v909_v6 = vsel %vm905_vm2, %v903_v1, 0.0  ;;  %v911_v8 = vsel %vm905_vm2, %v904_v44, 0.0  ;;  %p2924_p11 = scmp.ne.s32.totalorder %s2476_s27, %s2923_s1  ;;  %p2931_p1 = scmp.lt.s32.totalorder %s2929_s5, %s2923_s1 }
 0x6e9   : > { %v908_v39 = vadd.f32 %v907_v4, %v906_v2 }
 0x6ea   : > { %p2925_p12 = pnand %p2924_p11, %p3167_p5  ;;  %p2932_p2 = por %p2931_p1, %p2930_p0 }
 0x6eb   : > { %v910_v7 = vadd.f32 %v909_v6, %v908_v39 }
 0x6ec   : > { %p2926_p13 = pneg %p2925_p12 }
 0x6ed   : > { %v912_v46 = vadd.f32 %v911_v8, %v910_v7 }
 0x6ee   : > { %p2933_p3 = pnand %p2932_p2, %p2926_p13 }
 0x6ef   : > { %v914_v9 = vsel %vm905_vm2, %v912_v46, 0.0  ;;  %913 = vst.msk [vmem:[%s3654_s28] sm:$0xff] %vm905_vm2, %v912_v46 }
 0x6f0   : > { %915 = vadd.xlane.f32.xlu0 %v914_v9 }
 0x779   : > { %v916_v38 = vpop.xlane.xlu0 %915 }
 0x77a   : > { %2919 = vrsqrt.f32 %v916_v38 }
 0x787   : > { %v2920_v10 = vpop.eup %2919 }
 0x788   : > { %v918_v11 = vmul.f32 %v2920_v10, %v912_v46 }
 0x78a   : > { %1994 = vxpose.xlu1.b32.start.end [1/1] (short) (narrow) %v918_v11, 8 }
 0x806   : > { %v2010_v48 = vpop.trf.xlu1 }
 0x807   : > { %2763 = vmatmul.mubr.msk.f32.vlgmr.msra.gmra.mxu0 %vm905_vm2, %v2010_v48 }
 0x808   : > { %2766 = vmatpush3.msra.mxu0 %v2106_v12  ;;  %2773 = vmatprep.mubr.msk.f32.mxu0 %vm3016_vm1, %v3015_v3 }
 0x809   : > { %2767 = vmatprep.subr.mxu0 %v3015_v3 }
 0x80a   : > { %2768 = vmatpush3.msra.mxu0 %v2105_v40 }
 0x80b   : > { %2769 = vmatprep.subr.mxu0 %v3015_v3 }
 0x80c   : > { %2770 = vmatpush3.msra.mxu0 %v2104_v14 }
 0x80d   : > { %2771 = vmatprep.subr.mxu0 %v3015_v3 }
 0x80e   : > { %2772 = vmatpush3.msra.mxu0 %v2103_v16 }
 0x80f   : > { %2792 = vmatprep.subr.mxu0 %v3015_v3 }
 0x8c7   : > { %v2095_v42 = vpop.f32.mrf.mxu0 }
 0x8c8   : > { %v2099_v18 = vmul.f32 %v2920_v10, %v2095_v42 }
 0x8c9   : > { %v2764_v32 = vpop.f32.mrf.mxu0 }
 0x8ca   : > { %vm2100_vm8 = vcmp.ge.f32.partialorder %v2099_v18, 0.0  ;;  %v2101_v43 = vmul.f32 0.2, %v2099_v18 }
 0x8cc   : > { %v2102_v5 = vsel %vm2100_vm8, %v2099_v18, %v2101_v43 }
 0x8cd   : > { %2774 = vmatmul.mubr.msk.f32.vlgmr.msra.gmra.mxu0 %vm765_vm3, %v2102_v5 }
 0x8ce   : > { %2793 = vmatpush3.msra.mxu0 %v2254_v13  ;;  %2800 = vmatprep.mubr.msk.f32.mxu0 %vm3016_vm1, %v3015_v3 }
 0x8cf   : > { %2794 = vmatprep.subr.mxu0 %v3015_v3 }
 0x8d0   : > { %2795 = vmatpush3.msra.mxu0 %v2253_v57 }
 0x8d1   : > { %2796 = vmatprep.subr.mxu0 %v3015_v3 }
 0x8d2   : > { %2797 = vmatpush3.msra.mxu0 %v2252_v17 }
 0x8d3   : > { %2798 = vmatprep.subr.mxu0 %v3015_v3 }
 0x8d4   : > { %2799 = vmatpush3.msra.mxu0 %v2251_v28 }
 0x8d5   : > { %2801 = vmatmul.mubr.msk.f32.vlgmr.msra.gmra.mxu0 %vm765_vm3, %v3621_v59 }
 0x98d   : > { %v2176_v20 = vpop.f32.mrf.mxu0 }
 0x98e   : > { %2777 = vmatpush3.msra.mxu1 %v2176_v20 }
 0x98f   : > { %v2775_v36 = vpop.f32.mrf.mxu0  ;;  %2779 = vmatmul.mubr.msk.f32.vlgmr.msra.gmra.mxu1 %vm905_vm2, %v2010_v48  ;;  %2781 = vmatprep.subr.mxu1 %v3015_v3 }
 0x990   : > { %2782 = vmatpush3.msra.mxu1 %v2258_v22  ;;  %2789 = vmatprep.mubr.msk.f32.mxu1 %vm3016_vm1, %v3015_v3 }
 0x991   : > { %2783 = vmatprep.subr.mxu1 %v3015_v3 }
 0x992   : > { %2784 = vmatpush3.msra.mxu1 %v2257_v25 }
 0x993   : > { %2785 = vmatprep.subr.mxu1 %v3015_v3 }
 0x994   : > { %2786 = vmatpush3.msra.mxu1 %v2256_v49 }
 0x995   : > { %v2398_v30 = vpop.f32.mrf.mxu0  ;;  %2787 = vmatprep.subr.mxu1 %v3015_v3  ;;  %v2411_v3 = vld [vmem:[%s3796_s15] sm:$0xff] }
 0x996   : > { %2788 = vmatpush3.msra.mxu1 %v2255_v15 }
 0x997   : > { %v2802_v34 = vpop.f32.mrf.mxu0 }
 0xa4f   : > { %v2246_v53 = vpop.f32.mrf.mxu1 }
 0xa50   : > { %v2250_v52 = vmul.f32 %v2920_v10, %v2246_v53 }
 0xa51   : > { %v2780_v58 = vpop.f32.mrf.mxu1 }
 0xa52   : > { %2790 = vmatmul.mubr.msk.f32.vlgmr.msra.gmra.mxu1 %vm765_vm3, %v2250_v52 }
 0xb12   : > { %v2328_v56 = vpop.f32.mrf.mxu1 }
 0xb13   : > { %v2399_v31 = vadd.f32 %v2398_v30, %v2328_v56 }
 0xb14   : > { %v2791_v19 = vpop.f32.mrf.mxu1 }
 0xb15   : > { %v2409_v59 = vadd.f32 %v2641_v54, %v2399_v31 }
 0xb17   : > { %2921 = vtanh.f32 %v2409_v59 }
 0xb24   : > { %v2922_v45 = vpop.eup %2921 }
 0xb25   : > { %v2412_v21 = vmul.f32 %v2922_v45, %v2411_v3 }
 0xb27   : > { %v2413_v41 = vsel %vm765_vm3, %v2412_v21, 0.0 }
 0xb28   : > { %2414 = vadd.xlane.f32.xlu0 %v2413_v41 }
 0xb3e   : > { %2423 = vbcast.lane.b32.xlu0 %v2642_v63, 256 }
 0xbb1   : > { %v2415_v27 = vpop.xlane.xlu0 %2414 }
 0xbb5   : > { %v2424_v23 = vpop.permute.xlu0 %2423 }
 0xbb6   : > { %v2426_v24 = vadd.f32 %v2424_v23, %v2415_v27 }
 0xbb8   : > { %2429 = vperm.xlu0 %2851, %v2426_v24  }
 0xbb9   : > { %2936 = shalt.err (!%p2933_p3)
}
 0xbba   : > { %s2937_s28 = scalar_lea.hbm %s2473_s23, 128  ;;  %s2941_s2 = scalar_lea.hbm %s3799_s18, 256 }
 0xbbb   : > { %p2938_p4 = scmp.ne.s32.totalorder %s2473_s23, %s2937_s28  ;;  %p2942_p9 = scmp.lt.s32.totalorder %s2473_s23, %s3799_s18 }
 0xbbc   : > { %p2943_p10 = scmp.lt.s32.totalorder %s2941_s2, %s2937_s28 }
 0xbbd   : > { %p2939_p7 = pnand %p2938_p4, %p3167_p5 }
 0xbbe   : > { %p2944_p11 = por %p2943_p10, %p2942_p9 }
 0xbbf   : > { %p2940_p8 = pneg %p2939_p7 }
 0xbc1   : > { %p2945_p12 = pnand %p2944_p11, %p2940_p8 }
 0xbc3   : > { %2948 = shalt.err (!%p2945_p12)
}
 0xbc4   : > { %2804 = dma.vmem_to_hbm [thread:$0]  (%p3167_p5), %s2476_s27, 128, %s2473_s23, %s2443_s21   ;;  %vm2436_vm1 = vcmask 57344  }
 0xbc5   : > { %s2644_s5 = sshll.u32 %s3150_s9, 4  ;;  %s640_s1 = scalar_lea.vmem [#allocation3], %s3646_s3 }
 0xbc6   : > { %s2462_s22 = sshll.u32 %s640_s1, 4  ;;  %s2460_s4 = scalar_lea.hbm %s3798_s17, %s2644_s5  ;;  %s2463_s22 = int_to_ptr.vmem [resolvable:$true] %s2462_s22 }
 0xbc7   : > { %s2439_s28 = scalar_lea.sflag [#allocation4], %s3646_s3  ;;  %s2949_s30 = scalar_lea.vmem %s2463_s22, 16 }
 0xbc8   : > { %p2950_p13 = scmp.ne.s32.totalorder %s2463_s22, %s2949_s30  ;;  %s3020_s27 = smov [#allocation3]  }
 0xbc9   : > { %s2953_s9 = sshll.u32 %s3020_s27, 4  ;;  %s2954_s9 = int_to_ptr.vmem [resolvable:$false] %s2953_s9 }
 0xbca   : > { %p2951_p0 = pnand %p2950_p13, %p3167_p5  ;;  %s2955_s23 = scalar_lea.vmem %s2954_s9, 32 }
 0xbcb   : > { %p2956_p2 = scmp.lt.s32.totalorder %s2463_s22, %s2954_s9  ;;  %p2957_p3 = scmp.lt.s32.totalorder %s2955_s23, %s2949_s30 }
 0xbcc   : > { %p2952_p1 = pneg %p2951_p0 }
 0xbcd   : > { %p2958_p4 = por %p2957_p3, %p2956_p2 }
 0xbcf   : > { %p2959_p7 = pnand %p2958_p4, %p2952_p1 }
 0xc33   : > { %v2430_v26 = vpop.permute.xlu0 %2429 }
 0xc34   : > { %v2434_v29 = vrot.slane %v2430_v26, %v3331_v33 }
 0xc36   : > { %2437 = vst.msk [vmem:[%s640_s1] sm:$0x1] %vm2436_vm1, %v2434_v29 }
 0xc37   : > { %2962 = shalt.err (!%p2959_p7)
}
 0xc38   : > { %s2963_s21 = scalar_lea.hbm %s2460_s4, 16  ;;  %s2967_s2 = scalar_lea.hbm %s3798_s17, 32 }
 0xc39   : > { %p2964_p8 = scmp.ne.s32.totalorder %s2460_s4, %s2963_s21  ;;  %p2968_p11 = scmp.lt.s32.totalorder %s2460_s4, %s3798_s17 }
 0xc3a   : > { %p2969_p12 = scmp.lt.s32.totalorder %s2967_s2, %s2963_s21 }
 0xc3b   : > { %p2965_p9 = pnand %p2964_p8, %p3167_p5 }
 0xc3c   : > { %p2970_p13 = por %p2969_p12, %p2968_p11 }
 0xc3d   : > { %p2966_p10 = pneg %p2965_p9 }
 0xc3f   : > { %p2971_p0 = pnand %p2970_p13, %p2966_p10 }
 0xc41   : > { %2974 = shalt.err (!%p2971_p0)
}
 0xc42   : > { %2803 = dma.vmem_to_hbm [thread:$0]  (%p3167_p5), %s2463_s22, 16, %s2460_s4, %s2439_s28  }
 0xc43 PF: > { %s3833_s6 = sld [smem:[#allocation9_spill]]  ;;  %p2814_p1 = scmp.ge.s32.totalorder %s3013_s25, 2 }
 0xc45   : > { %p2808_p2 = pnand %p2814_p1, %p3171_p6 }
 0xc47   : > { %p2809_p3 = pneg %p2808_p2 }
 0xc49   : > { %s2493_s30 = sand.u32 1, %s3833_s6  }
 0xc4a   : > { %s2494_s27 = scalar_lea.sflag [#allocation4], %s2493_s30 }
 0xc4b   : > { %2992 = dma.done.wait (%p2809_p3), %s2494_s27, 16  }
 0xc4c   : > { %2994 = vsyncadd (%p2809_p3), %s2494_s27, 4294967280  ;;  %s2502_s9 = scalar_lea.sflag [#allocation6], %s2493_s30 }
 0xc4d   : > { %2996 = dma.done.wait (%p2809_p3), %s2502_s9, 128  }
 0xc4e   : > { %2998 = vsyncadd (%p2809_p3), %s2502_s9, 4294967168  ;;  %s3835_s25 = sld [smem:[#allocation11_spill]]  ;;  %s3838_s23 = smov %s3005_s24 }
 0xc4f   : > { %s3836_s21 = sld [smem:[#allocation10_spill]] }
 0xc50   : > { %s3837_s2 = sld [smem:[#allocation12_spill]] }
 0xc54   : > { %p36_p5 = scmp.ge.s32.totalorder %s3835_s25, 4  }
 0xc55   : > { %s3839_s24 = smov %s3836_s21 }
 0xc56   :  { %38 = sbr.rel (!%p36_p5) target bundleno = 14 (0xe), region = 167 }
 0xc5b   :  { %2519 = vsyncpa [#allocation4], 1 }
 0xc5c   :  { %2521 = vsyncpa [#allocation4 + $0x1], 1 }
 0xc5d   :  { %2522 = vsyncpa [#allocation6], 1 }
 0xc5e   :  { %2524 = vsyncpa [#allocation6 + $0x1], 1 }

</bundles_post_ra>
